<compile_context>
chip_gen: v6e
topology: v6e:2x2x1
jax: 0.10.0
libtpu: 0.0.40
codegen_flags: <defaults>
</compile_context>

<pallas_src>
import jax
import jax.numpy as jnp
from jax.experimental import pallas as pl
from jax.experimental.pallas import tpu as pltpu

_LANE = 128


def _round_up(x, m):
    return (x + m - 1) // m * m


def _make_decoder_kernel(n_layers, h_pad, batch):
    """Kernel closure over static layer count / padded hidden width / batch size."""

    def kernel(*refs):
        # inputs : inp(SMEM), emb, h, c, (W_cat, b) * L, fc_wT_tile, fc_b_tile
        # outputs: pred_tile, h_out, c_out
        # scratch: x0 (gathered embedding), h_top (top-layer hidden, persists across vocab tiles)
        inp_ref, emb_ref, h_ref, c_ref = refs[0], refs[1], refs[2], refs[3]
        idx = 4
        layer_refs = []
        for _ in range(n_layers):
            layer_refs.append((refs[idx], refs[idx + 1]))
            idx += 2
        fcw_ref, fcb_ref = refs[idx], refs[idx + 1]
        pred_ref, hout_ref, cout_ref = refs[idx + 2], refs[idx + 3], refs[idx + 4]
        x0_ref, htop_ref = refs[idx + 5], refs[idx + 6]

        H = h_pad

        # ---- LSTM stack: runs only on the first vocab tile; result kept in VMEM scratch. ----
        @pl.when(pl.program_id(0) == 0)
        def _lstm():
            # Fused embedding gather: SMEM token id -> dynamic row slice of the VMEM table.
            for b in range(batch):
                x0_ref[pl.ds(b, 1), :] = emb_ref[pl.ds(inp_ref[b], 1), :]
            x = x0_ref[...]                               # [B, E_pad]; dropout == identity (eval)

            for l, (w_ref, b_ref) in enumerate(layer_refs):
                h_prev = h_ref[l]                         # [B, H_pad]
                c_prev = c_ref[l]                         # [B, H_pad]
                xh = jnp.concatenate([x, h_prev], axis=-1)
                # single fused matmul: gates = [x, h] @ [W_ih^T ; W_hh^T] + (b_ih + b_hh)
                gates = (
                    jnp.dot(xh, w_ref[...], preferred_element_type=jnp.float32)
                    + b_ref[...]
                )                                         # [B, 4*H_pad], gate order i, f, g, o
                i_g = jax.nn.sigmoid(gates[:, 0 * H:1 * H])
                f_g = jax.nn.sigmoid(gates[:, 1 * H:2 * H])
                g_g = jnp.tanh(gates[:, 2 * H:3 * H])
                o_g = jax.nn.sigmoid(gates[:, 3 * H:4 * H])
                c_new = f_g * c_prev + i_g * g_g
                h_new = o_g * jnp.tanh(c_new)
                hout_ref[l] = h_new
                cout_ref[l] = c_new
                x = h_new                                 # inter-layer dropout == identity (eval)

            htop_ref[...] = x

        # ---- fc_out: one lane-dense vocab tile per grid step. ----
        pred_ref[...] = (
            jnp.dot(htop_ref[...], fcw_ref[...], preferred_element_type=jnp.float32)
            + fcb_ref[...]
        )

    return kernel


def prepare_params(params, *, v_tile=1024):
    """One-time weight layout: transpose, fuse W_ih/W_hh and biases, pad to lane multiples."""
    emb_table, layer_params, fc_w, fc_b = params
    V, E = emb_table.shape
    H = layer_params[0][1].shape[1]          # w_hh: [4H, H]

    E_pad = _round_up(E, _LANE)
    H_pad = _round_up(H, _LANE)
    V_pad = _round_up(V, _LANE)
    TV = min(V_pad, v_tile)
    V_pad = _round_up(V_pad, TV)

    emb_p = jnp.zeros((V, E_pad), jnp.float32).at[:, :E].set(emb_table.astype(jnp.float32))

    layers = []
    for l, (w_ih, w_hh, b_ih, b_hh) in enumerate(layer_params):
        in_dim = w_ih.shape[1]
        in_pad = E_pad if l == 0 else H_pad
        w_cat = jnp.zeros((in_pad + H_pad, 4 * H_pad), jnp.float32)
        b_cat = jnp.zeros((1, 4 * H_pad), jnp.float32)
        w_ih_t = w_ih.T.astype(jnp.float32)           # [in_dim, 4H]
        w_hh_t = w_hh.T.astype(jnp.float32)           # [H, 4H]
        bias = (b_ih + b_hh).astype(jnp.float32)      # [4H]
        for g in range(4):                            # per-gate column placement (i, f, g, o)
            cs, ce = g * H, (g + 1) * H
            ps = g * H_pad
            w_cat = w_cat.at[:in_dim, ps:ps + H].set(w_ih_t[:, cs:ce])
            w_cat = w_cat.at[in_pad:in_pad + H, ps:ps + H].set(w_hh_t[:, cs:ce])
            b_cat = b_cat.at[0, ps:ps + H].set(bias[cs:ce])
        layers.append((w_cat, b_cat))

    fc_wT = jnp.zeros((H_pad, V_pad), jnp.float32).at[:H, :V].set(fc_w.T.astype(jnp.float32))
    fc_bp = jnp.zeros((1, V_pad), jnp.float32).at[0, :V].set(fc_b.astype(jnp.float32))

    dims = dict(E=E, H=H, V=V, E_pad=E_pad, H_pad=H_pad, V_pad=V_pad, TV=TV,
                n_layers=len(layer_params))
    return dict(emb=emb_p, layers=layers, fc_wT=fc_wT, fc_b=fc_bp, dims=dims)


def decoder_forward(inp, hidden, cell, prepped):
    """inp: int32 [B]; hidden/cell: f32 [L, B, H].  Returns (pred [B,V], hidden, cell)."""
    d = prepped["dims"]
    L, B, H = hidden.shape
    E_pad, H_pad, V_pad, TV, V = d["E_pad"], d["H_pad"], d["V_pad"], d["TV"], d["V"]

    h_in = jnp.pad(hidden.astype(jnp.float32), ((0, 0), (0, 0), (0, H_pad - H)))
    c_in = jnp.pad(cell.astype(jnp.float32), ((0, 0), (0, 0), (0, H_pad - H)))
    inp_i = inp.astype(jnp.int32)

    kernel_inputs = [inp_i, prepped["emb"], h_in, c_in]
    in_specs = [
        pl.BlockSpec(memory_space=pltpu.MemorySpace.SMEM),                 # token ids
        pl.BlockSpec(prepped["emb"].shape, lambda j: (0, 0)),              # emb table (VMEM)
        pl.BlockSpec((L, B, H_pad), lambda j: (0, 0, 0)),                  # hidden
        pl.BlockSpec((L, B, H_pad), lambda j: (0, 0, 0)),                  # cell
    ]
    for (w_cat, b_cat) in prepped["layers"]:
        kernel_inputs += [w_cat, b_cat]
        in_specs += [pl.BlockSpec(w_cat.shape, lambda j: (0, 0)),
                     pl.BlockSpec(b_cat.shape, lambda j: (0, 0))]
    kernel_inputs += [prepped["fc_wT"], prepped["fc_b"]]
    in_specs += [pl.BlockSpec((H_pad, TV), lambda j: (0, j)),
                 pl.BlockSpec((1, TV), lambda j: (0, j))]

    num_v_tiles = V_pad // TV

    pred_p, h_out_p, c_out_p = pl.pallas_call(
        _make_decoder_kernel(L, H_pad, B),
        grid=(num_v_tiles,),
        out_shape=(
            jax.ShapeDtypeStruct((B, V_pad), jnp.float32),            # prediction (padded)
            jax.ShapeDtypeStruct((L, B, H_pad), jnp.float32),         # new hidden (padded)
            jax.ShapeDtypeStruct((L, B, H_pad), jnp.float32),         # new cell   (padded)
        ),
        in_specs=in_specs,
        out_specs=(
            pl.BlockSpec((B, TV), lambda j: (0, j)),
            pl.BlockSpec((L, B, H_pad), lambda j: (0, 0, 0)),
            pl.BlockSpec((L, B, H_pad), lambda j: (0, 0, 0)),
        ),
        scratch_shapes=[pltpu.VMEM((B, E_pad), jnp.float32),          # gathered embedding
                        pltpu.VMEM((B, H_pad), jnp.float32)],         # top-layer hidden
        input_output_aliases={2: 1, 3: 2},                            # h/c updated in place
        compiler_params=pltpu.CompilerParams(dimension_semantics=("arbitrary",)),
    )(*kernel_inputs)

    return pred_p[:, :V], h_out_p[..., :H], c_out_p[..., :H]


def _reference_forward(inp, hidden, cell, params):
    """Pure-JAX reference with identical semantics (correctness check)."""
    emb_table, layer_params, fc_w, fc_b = params
    H = hidden.shape[-1]
    x = emb_table[inp].astype(jnp.float32)
    new_h, new_c = [], []
    for l, (w_ih, w_hh, b_ih, b_hh) in enumerate(layer_params):
        gates = x @ w_ih.T + hidden[l] @ w_hh.T + b_ih + b_hh
        i_g = jax.nn.sigmoid(gates[:, 0 * H:1 * H])
        f_g = jax.nn.sigmoid(gates[:, 1 * H:2 * H])
        g_g = jnp.tanh(gates[:, 2 * H:3 * H])
        o_g = jax.nn.sigmoid(gates[:, 3 * H:4 * H])
        c_new = f_g * cell[l] + i_g * g_g
        h_new = o_g * jnp.tanh(c_new)
        new_h.append(h_new)
        new_c.append(c_new)
        x = h_new
    pred = x @ fc_w.T + fc_b
    return pred, jnp.stack(new_h), jnp.stack(new_c)


def init_params(key, output_dim, emb_dim, hid_dim, n_layers):
    """Deterministic synthetic params matching nn.Embedding / nn.LSTM / nn.Linear shapes."""
    keys = jax.random.split(key, 2 + 4 * n_layers + 2)
    k_it = iter(keys)
    scale = 0.1
    emb_table = scale * jax.random.normal(next(k_it), (output_dim, emb_dim), jnp.float32)
    layer_params = []
    for l in range(n_layers):
        in_dim = emb_dim if l == 0 else hid_dim
        w_ih = scale * jax.random.normal(next(k_it), (4 * hid_dim, in_dim), jnp.float32)
        w_hh = scale * jax.random.normal(next(k_it), (4 * hid_dim, hid_dim), jnp.float32)
        b_ih = scale * jax.random.normal(next(k_it), (4 * hid_dim,), jnp.float32)
        b_hh = scale * jax.random.normal(next(k_it), (4 * hid_dim,), jnp.float32)
        layer_params.append((w_ih, w_hh, b_ih, b_hh))
    fc_w = scale * jax.random.normal(next(k_it), (output_dim, hid_dim), jnp.float32)
    fc_b = scale * jax.random.normal(next(k_it), (output_dim,), jnp.float32)
    return emb_table, layer_params, fc_w, fc_b


if __name__ == "__main__":
    OUTPUT_DIM = 64   # vocab size
    EMB_DIM = 32
    HID_DIM = 32
    N_LAYERS = 2
    BATCH = 8

    key = jax.random.PRNGKey(0)
    k_params, k_inp, k_h, k_c = jax.random.split(key, 4)

    params = init_params(k_params, OUTPUT_DIM, EMB_DIM, HID_DIM, N_LAYERS)
    inp = jax.random.randint(k_inp, (BATCH,), 0, OUTPUT_DIM, dtype=jnp.int32)
    hidden = 0.1 * jax.random.normal(k_h, (N_LAYERS, BATCH, HID_DIM), jnp.float32)
    cell = 0.1 * jax.random.normal(k_c, (N_LAYERS, BATCH, HID_DIM), jnp.float32)

    # pure-JAX reference for the correctness check
    pred_r, h_r, c_r = _reference_forward(inp, hidden, cell, params)

    # one-time weight prep (hoisted out of the per-step path), then the kernel step
    prepped = prepare_params(params)
    pred, h_out, c_out = decoder_forward(inp, hidden, cell, prepped)
    jax.block_until_ready((pred, h_out, c_out))

    assert pred.shape == (BATCH, OUTPUT_DIM)
    assert h_out.shape == (N_LAYERS, BATCH, HID_DIM)
    assert c_out.shape == (N_LAYERS, BATCH, HID_DIM)
    assert jnp.allclose(pred, pred_r, atol=1e-5, rtol=1e-5)
    assert jnp.allclose(h_out, h_r, atol=1e-5, rtol=1e-5)
    assert jnp.allclose(c_out, c_r, atol=1e-5, rtol=1e-5)

    print("KERNEL_OK")
</pallas_src>

<mosaic_0001>
module attributes {stable_mosaic.version = 11 : i64} {
  func.func @kernel(%arg0: i32, %arg1: memref<8xi32, #tpu.memory_space<smem>>, %arg2: memref<64x128xf32, #tpu.memory_space<vmem>>, %arg3: memref<2x8x128xf32, #tpu.memory_space<vmem>>, %arg4: memref<2x8x128xf32, #tpu.memory_space<vmem>>, %arg5: memref<256x512xf32, #tpu.memory_space<vmem>>, %arg6: memref<1x512xf32, #tpu.memory_space<vmem>>, %arg7: memref<256x512xf32, #tpu.memory_space<vmem>>, %arg8: memref<1x512xf32, #tpu.memory_space<vmem>>, %arg9: memref<128x128xf32, #tpu.memory_space<vmem>>, %arg10: memref<1x128xf32, #tpu.memory_space<vmem>>, %arg11: memref<8x128xf32, #tpu.memory_space<vmem>>, %arg12: memref<2x8x128xf32, #tpu.memory_space<vmem>>, %arg13: memref<2x8x128xf32, #tpu.memory_space<vmem>>, %arg14: memref<8x128xf32, #tpu.memory_space<vmem>>, %arg15: memref<8x128xf32, #tpu.memory_space<vmem>>) attributes {dimension_semantics = [#tpu.dimension_semantics<arbitrary>], iteration_bounds = array<i64: 1>, scalar_prefetch = 0 : i64, scratch_operands = 2 : i64, tpu.core_type = #tpu.core_type<tc>, window_params = [{transform_indices = @transform_0, window_bounds = array<i64: 8>}, {pipeline_mode = #tpu.pipeline_mode<synchronous>, transform_indices = @transform_1, window_bounds = array<i64: 64, 128>}, {pipeline_mode = #tpu.pipeline_mode<synchronous>, transform_indices = @transform_2, window_bounds = array<i64: 2, 8, 128>}, {pipeline_mode = #tpu.pipeline_mode<synchronous>, transform_indices = @transform_3, window_bounds = array<i64: 2, 8, 128>}, {pipeline_mode = #tpu.pipeline_mode<synchronous>, transform_indices = @transform_4, window_bounds = array<i64: 256, 512>}, {pipeline_mode = #tpu.pipeline_mode<synchronous>, transform_indices = @transform_5, window_bounds = array<i64: 1, 512>}, {pipeline_mode = #tpu.pipeline_mode<synchronous>, transform_indices = @transform_6, window_bounds = array<i64: 256, 512>}, {pipeline_mode = #tpu.pipeline_mode<synchronous>, transform_indices = @transform_7, window_bounds = array<i64: 1, 512>}, {transform_indices = @transform_8, window_bounds = array<i64: 128, 128>}, {transform_indices = @transform_9, window_bounds = array<i64: 1, 128>}, {transform_indices = @transform_10, window_bounds = array<i64: 8, 128>}, {pipeline_mode = #tpu.pipeline_mode<synchronous>, transform_indices = @transform_11, window_bounds = array<i64: 2, 8, 128>}, {pipeline_mode = #tpu.pipeline_mode<synchronous>, transform_indices = @transform_12, window_bounds = array<i64: 2, 8, 128>}]} {
    %c0_i32 = arith.constant 0 : i32
    %0 = arith.cmpi eq, %arg0, %c0_i32 : i32
    %1 = arith.extui %0 : i1 to i32
    %c0_i32_0 = arith.constant 0 : i32
    %2 = arith.cmpi ne, %1, %c0_i32_0 : i32
    scf.if %2 {
      %c0_8 = arith.constant 0 : index
      %10 = memref.load %arg1[%c0_8] : memref<8xi32, #tpu.memory_space<smem>>
      %11 = arith.index_cast %10 : i32 to index
      %c0_9 = arith.constant 0 : index
      %12 = vector.load %arg2[%11, %c0_9] : memref<64x128xf32, #tpu.memory_space<vmem>>, vector<1x128xf32>
      %c0_10 = arith.constant 0 : index
      %c0_11 = arith.constant 0 : index
      %13 = vector.load %arg14[%c0_10, %c0_11] : memref<8x128xf32, #tpu.memory_space<vmem>>, vector<1x128xf32>
      tpu.vector_store %arg14[%c0_10, %c0_11], %12 {strides = array<i32>} : memref<8x128xf32, #tpu.memory_space<vmem>>, vector<1x128xf32>,
      %c1 = arith.constant 1 : index
      %14 = memref.load %arg1[%c1] : memref<8xi32, #tpu.memory_space<smem>>
      %15 = arith.index_cast %14 : i32 to index
      %c0_12 = arith.constant 0 : index
      %16 = vector.load %arg2[%15, %c0_12] : memref<64x128xf32, #tpu.memory_space<vmem>>, vector<1x128xf32>
      %c1_13 = arith.constant 1 : index
      %c0_14 = arith.constant 0 : index
      %17 = vector.load %arg14[%c1_13, %c0_14] : memref<8x128xf32, #tpu.memory_space<vmem>>, vector<1x128xf32>
      tpu.vector_store %arg14[%c1_13, %c0_14], %16 {strides = array<i32>} : memref<8x128xf32, #tpu.memory_space<vmem>>, vector<1x128xf32>,
      %c2 = arith.constant 2 : index
      %18 = memref.load %arg1[%c2] : memref<8xi32, #tpu.memory_space<smem>>
      %19 = arith.index_cast %18 : i32 to index
      %c0_15 = arith.constant 0 : index
      %20 = vector.load %arg2[%19, %c0_15] : memref<64x128xf32, #tpu.memory_space<vmem>>, vector<1x128xf32>
      %c2_16 = arith.constant 2 : index
      %c0_17 = arith.constant 0 : index
      %21 = vector.load %arg14[%c2_16, %c0_17] : memref<8x128xf32, #tpu.memory_space<vmem>>, vector<1x128xf32>
      tpu.vector_store %arg14[%c2_16, %c0_17], %20 {strides = array<i32>} : memref<8x128xf32, #tpu.memory_space<vmem>>, vector<1x128xf32>,
      %c3 = arith.constant 3 : index
      %22 = memref.load %arg1[%c3] : memref<8xi32, #tpu.memory_space<smem>>
      %23 = arith.index_cast %22 : i32 to index
      %c0_18 = arith.constant 0 : index
      %24 = vector.load %arg2[%23, %c0_18] : memref<64x128xf32, #tpu.memory_space<vmem>>, vector<1x128xf32>
      %c3_19 = arith.constant 3 : index
      %c0_20 = arith.constant 0 : index
      %25 = vector.load %arg14[%c3_19, %c0_20] : memref<8x128xf32, #tpu.memory_space<vmem>>, vector<1x128xf32>
      tpu.vector_store %arg14[%c3_19, %c0_20], %24 {strides = array<i32>} : memref<8x128xf32, #tpu.memory_space<vmem>>, vector<1x128xf32>,
      %c4 = arith.constant 4 : index
      %26 = memref.load %arg1[%c4] : memref<8xi32, #tpu.memory_space<smem>>
      %27 = arith.index_cast %26 : i32 to index
      %c0_21 = arith.constant 0 : index
      %28 = vector.load %arg2[%27, %c0_21] : memref<64x128xf32, #tpu.memory_space<vmem>>, vector<1x128xf32>
      %c4_22 = arith.constant 4 : index
      %c0_23 = arith.constant 0 : index
      %29 = vector.load %arg14[%c4_22, %c0_23] : memref<8x128xf32, #tpu.memory_space<vmem>>, vector<1x128xf32>
      tpu.vector_store %arg14[%c4_22, %c0_23], %28 {strides = array<i32>} : memref<8x128xf32, #tpu.memory_space<vmem>>, vector<1x128xf32>,
      %c5 = arith.constant 5 : index
      %30 = memref.load %arg1[%c5] : memref<8xi32, #tpu.memory_space<smem>>
      %31 = arith.index_cast %30 : i32 to index
      %c0_24 = arith.constant 0 : index
      %32 = vector.load %arg2[%31, %c0_24] : memref<64x128xf32, #tpu.memory_space<vmem>>, vector<1x128xf32>
      %c5_25 = arith.constant 5 : index
      %c0_26 = arith.constant 0 : index
      %33 = vector.load %arg14[%c5_25, %c0_26] : memref<8x128xf32, #tpu.memory_space<vmem>>, vector<1x128xf32>
      tpu.vector_store %arg14[%c5_25, %c0_26], %32 {strides = array<i32>} : memref<8x128xf32, #tpu.memory_space<vmem>>, vector<1x128xf32>,
      %c6 = arith.constant 6 : index
      %34 = memref.load %arg1[%c6] : memref<8xi32, #tpu.memory_space<smem>>
      %35 = arith.index_cast %34 : i32 to index
      %c0_27 = arith.constant 0 : index
      %36 = vector.load %arg2[%35, %c0_27] : memref<64x128xf32, #tpu.memory_space<vmem>>, vector<1x128xf32>
      %c6_28 = arith.constant 6 : index
      %c0_29 = arith.constant 0 : index
      %37 = vector.load %arg14[%c6_28, %c0_29] : memref<8x128xf32, #tpu.memory_space<vmem>>, vector<1x128xf32>
      tpu.vector_store %arg14[%c6_28, %c0_29], %36 {strides = array<i32>} : memref<8x128xf32, #tpu.memory_space<vmem>>, vector<1x128xf32>,
      %c7 = arith.constant 7 : index
      %38 = memref.load %arg1[%c7] : memref<8xi32, #tpu.memory_space<smem>>
      %39 = arith.index_cast %38 : i32 to index
      %c0_30 = arith.constant 0 : index
      %40 = vector.load %arg2[%39, %c0_30] : memref<64x128xf32, #tpu.memory_space<vmem>>, vector<1x128xf32>
      %c7_31 = arith.constant 7 : index
      %c0_32 = arith.constant 0 : index
      %41 = vector.load %arg14[%c7_31, %c0_32] : memref<8x128xf32, #tpu.memory_space<vmem>>, vector<1x128xf32>
      tpu.vector_store %arg14[%c7_31, %c0_32], %40 {strides = array<i32>} : memref<8x128xf32, #tpu.memory_space<vmem>>, vector<1x128xf32>,
      %c0_33 = arith.constant 0 : index
      %c0_34 = arith.constant 0 : index
      %42 = vector.load %arg14[%c0_33, %c0_34] : memref<8x128xf32, #tpu.memory_space<vmem>>, vector<8x128xf32>
      %c0_35 = arith.constant 0 : index
      %c0_36 = arith.constant 0 : index
      %c0_37 = arith.constant 0 : index
      %43 = vector.load %arg3[%c0_35, %c0_36, %c0_37] : memref<2x8x128xf32, #tpu.memory_space<vmem>>, vector<1x8x128xf32>
      %44 = vector.shape_cast %43 : vector<1x8x128xf32> to vector<8x128xf32>
      %c0_38 = arith.constant 0 : index
      %c0_39 = arith.constant 0 : index
      %c0_40 = arith.constant 0 : index
      %45 = vector.load %arg4[%c0_38, %c0_39, %c0_40] : memref<2x8x128xf32, #tpu.memory_space<vmem>>, vector<1x8x128xf32>
      %46 = vector.shape_cast %45 : vector<1x8x128xf32> to vector<8x128xf32>
      %47 = tpu.concatenate %42, %44 in 1 : vector<8x128xf32>, vector<8x128xf32> -> vector<8x256xf32>
      %c0_41 = arith.constant 0 : index
      %c0_42 = arith.constant 0 : index
      %48 = vector.load %arg5[%c0_41, %c0_42] : memref<256x512xf32, #tpu.memory_space<vmem>>, vector<256x512xf32>
      %cst_43 = arith.constant dense<0.000000e+00> : vector<8x512xf32>
      %49 = tpu.matmul %47, %48, %cst_43 {dimension_numbers = #tpu.dot_dimension_numbers<[1], [0], [0], [1], [0, 0, 1, 1], [], []>} : vector<8x256xf32>, vector<256x512xf32>, vector<8x512xf32> -> vector<8x512xf32>
      %c0_44 = arith.constant 0 : index
      %c0_45 = arith.constant 0 : index
      %50 = vector.load %arg6[%c0_44, %c0_45] : memref<1x512xf32, #tpu.memory_space<vmem>>, vector<1x512xf32>
      %51 = vector.broadcast %50 : vector<1x512xf32> to vector<8x512xf32>
      %52 = arith.addf %49, %51 : vector<8x512xf32>
      %53 = vector.extract_strided_slice %52 {offsets = [0, 0], sizes = [8, 128], strides = [1, 1]} : vector<8x512xf32> to vector<8x128xf32>
      %54 = arith.negf %53 : vector<8x128xf32>
      %55 = math.exp %54 : vector<8x128xf32>
      %cst_46 = arith.constant 1.000000e+00 : f32
      %56 = vector.broadcast %cst_46 : f32 to vector<8x128xf32>
      %57 = arith.addf %56, %55 : vector<8x128xf32>
      %58 = arith.divf %56, %57 : vector<8x128xf32>
      %59 = vector.extract_strided_slice %52 {offsets = [0, 128], sizes = [8, 128], strides = [1, 1]} : vector<8x512xf32> to vector<8x128xf32>
      %60 = arith.negf %59 : vector<8x128xf32>
      %61 = math.exp %60 : vector<8x128xf32>
      %cst_47 = arith.constant 1.000000e+00 : f32
      %62 = vector.broadcast %cst_47 : f32 to vector<8x128xf32>
      %63 = arith.addf %62, %61 : vector<8x128xf32>
      %64 = arith.divf %62, %63 : vector<8x128xf32>
      %65 = vector.extract_strided_slice %52 {offsets = [0, 256], sizes = [8, 128], strides = [1, 1]} : vector<8x512xf32> to vector<8x128xf32>
      %66 = math.tanh %65 : vector<8x128xf32>
      %67 = vector.extract_strided_slice %52 {offsets = [0, 384], sizes = [8, 128], strides = [1, 1]} : vector<8x512xf32> to vector<8x128xf32>
      %68 = arith.negf %67 : vector<8x128xf32>
      %69 = math.exp %68 : vector<8x128xf32>
      %cst_48 = arith.constant 1.000000e+00 : f32
      %70 = vector.broadcast %cst_48 : f32 to vector<8x128xf32>
      %71 = arith.addf %70, %69 : vector<8x128xf32>
      %72 = arith.divf %70, %71 : vector<8x128xf32>
      %73 = arith.mulf %64, %46 : vector<8x128xf32>
      %74 = arith.mulf %58, %66 : vector<8x128xf32>
      %75 = arith.addf %73, %74 : vector<8x128xf32>
      %76 = math.tanh %75 : vector<8x128xf32>
      %77 = arith.mulf %72, %76 : vector<8x128xf32>
      %c0_49 = arith.constant 0 : index
      %c0_50 = arith.constant 0 : index
      %c0_51 = arith.constant 0 : index
      %78 = vector.load %arg12[%c0_49, %c0_50, %c0_51] : memref<2x8x128xf32, #tpu.memory_space<vmem>>, vector<1x8x128xf32>
      %79 = vector.shape_cast %78 : vector<1x8x128xf32> to vector<8x128xf32>
      %80 = vector.shape_cast %77 : vector<8x128xf32> to vector<1x8x128xf32>
      tpu.vector_store %arg12[%c0_49, %c0_50, %c0_51], %80 {strides = array<i32>} : memref<2x8x128xf32, #tpu.memory_space<vmem>>, vector<1x8x128xf32>,
      %c0_52 = arith.constant 0 : index
      %c0_53 = arith.constant 0 : index
      %c0_54 = arith.constant 0 : index
      %81 = vector.load %arg13[%c0_52, %c0_53, %c0_54] : memref<2x8x128xf32, #tpu.memory_space<vmem>>, vector<1x8x128xf32>
      %82 = vector.shape_cast %81 : vector<1x8x128xf32> to vector<8x128xf32>
      %83 = vector.shape_cast %75 : vector<8x128xf32> to vector<1x8x128xf32>
      tpu.vector_store %arg13[%c0_52, %c0_53, %c0_54], %83 {strides = array<i32>} : memref<2x8x128xf32, #tpu.memory_space<vmem>>, vector<1x8x128xf32>,
      %c1_55 = arith.constant 1 : index
      %c0_56 = arith.constant 0 : index
      %c0_57 = arith.constant 0 : index
      %84 = vector.load %arg3[%c1_55, %c0_56, %c0_57] : memref<2x8x128xf32, #tpu.memory_space<vmem>>, vector<1x8x128xf32>
      %85 = vector.shape_cast %84 : vector<1x8x128xf32> to vector<8x128xf32>
      %c1_58 = arith.constant 1 : index
      %c0_59 = arith.constant 0 : index
      %c0_60 = arith.constant 0 : index
      %86 = vector.load %arg4[%c1_58, %c0_59, %c0_60] : memref<2x8x128xf32, #tpu.memory_space<vmem>>, vector<1x8x128xf32>
      %87 = vector.shape_cast %86 : vector<1x8x128xf32> to vector<8x128xf32>
      %88 = tpu.concatenate %77, %85 in 1 : vector<8x128xf32>, vector<8x128xf32> -> vector<8x256xf32>
      %c0_61 = arith.constant 0 : index
      %c0_62 = arith.constant 0 : index
      %89 = vector.load %arg7[%c0_61, %c0_62] : memref<256x512xf32, #tpu.memory_space<vmem>>, vector<256x512xf32>
      %cst_63 = arith.constant dense<0.000000e+00> : vector<8x512xf32>
      %90 = tpu.matmul %88, %89, %cst_63 {dimension_numbers = #tpu.dot_dimension_numbers<[1], [0], [0], [1], [0, 0, 1, 1], [], []>} : vector<8x256xf32>, vector<256x512xf32>, vector<8x512xf32> -> vector<8x512xf32>
      %c0_64 = arith.constant 0 : index
      %c0_65 = arith.constant 0 : index
      %91 = vector.load %arg8[%c0_64, %c0_65] : memref<1x512xf32, #tpu.memory_space<vmem>>, vector<1x512xf32>
      %92 = vector.broadcast %91 : vector<1x512xf32> to vector<8x512xf32>
      %93 = arith.addf %90, %92 : vector<8x512xf32>
      %94 = vector.extract_strided_slice %93 {offsets = [0, 0], sizes = [8, 128], strides = [1, 1]} : vector<8x512xf32> to vector<8x128xf32>
      %95 = arith.negf %94 : vector<8x128xf32>
      %96 = math.exp %95 : vector<8x128xf32>
      %cst_66 = arith.constant 1.000000e+00 : f32
      %97 = vector.broadcast %cst_66 : f32 to vector<8x128xf32>
      %98 = arith.addf %97, %96 : vector<8x128xf32>
      %99 = arith.divf %97, %98 : vector<8x128xf32>
      %100 = vector.extract_strided_slice %93 {offsets = [0, 128], sizes = [8, 128], strides = [1, 1]} : vector<8x512xf32> to vector<8x128xf32>
      %101 = arith.negf %100 : vector<8x128xf32>
      %102 = math.exp %101 : vector<8x128xf32>
      %cst_67 = arith.constant 1.000000e+00 : f32
      %103 = vector.broadcast %cst_67 : f32 to vector<8x128xf32>
      %104 = arith.addf %103, %102 : vector<8x128xf32>
      %105 = arith.divf %103, %104 : vector<8x128xf32>
      %106 = vector.extract_strided_slice %93 {offsets = [0, 256], sizes = [8, 128], strides = [1, 1]} : vector<8x512xf32> to vector<8x128xf32>
      %107 = math.tanh %106 : vector<8x128xf32>
      %108 = vector.extract_strided_slice %93 {offsets = [0, 384], sizes = [8, 128], strides = [1, 1]} : vector<8x512xf32> to vector<8x128xf32>
      %109 = arith.negf %108 : vector<8x128xf32>
      %110 = math.exp %109 : vector<8x128xf32>
      %cst_68 = arith.constant 1.000000e+00 : f32
      %111 = vector.broadcast %cst_68 : f32 to vector<8x128xf32>
      %112 = arith.addf %111, %110 : vector<8x128xf32>
      %113 = arith.divf %111, %112 : vector<8x128xf32>
      %114 = arith.mulf %105, %87 : vector<8x128xf32>
      %115 = arith.mulf %99, %107 : vector<8x128xf32>
      %116 = arith.addf %114, %115 : vector<8x128xf32>
      %117 = math.tanh %116 : vector<8x128xf32>
      %118 = arith.mulf %113, %117 : vector<8x128xf32>
      %c1_69 = arith.constant 1 : index
      %c0_70 = arith.constant 0 : index
      %c0_71 = arith.constant 0 : index
      %119 = vector.load %arg12[%c1_69, %c0_70, %c0_71] : memref<2x8x128xf32, #tpu.memory_space<vmem>>, vector<1x8x128xf32>
      %120 = vector.shape_cast %119 : vector<1x8x128xf32> to vector<8x128xf32>
      %121 = vector.shape_cast %118 : vector<8x128xf32> to vector<1x8x128xf32>
      tpu.vector_store %arg12[%c1_69, %c0_70, %c0_71], %121 {strides = array<i32>} : memref<2x8x128xf32, #tpu.memory_space<vmem>>, vector<1x8x128xf32>,
      %c1_72 = arith.constant 1 : index
      %c0_73 = arith.constant 0 : index
      %c0_74 = arith.constant 0 : index
      %122 = vector.load %arg13[%c1_72, %c0_73, %c0_74] : memref<2x8x128xf32, #tpu.memory_space<vmem>>, vector<1x8x128xf32>
      %123 = vector.shape_cast %122 : vector<1x8x128xf32> to vector<8x128xf32>
      %124 = vector.shape_cast %116 : vector<8x128xf32> to vector<1x8x128xf32>
      tpu.vector_store %arg13[%c1_72, %c0_73, %c0_74], %124 {strides = array<i32>} : memref<2x8x128xf32, #tpu.memory_space<vmem>>, vector<1x8x128xf32>,
      %c0_75 = arith.constant 0 : index
      %c0_76 = arith.constant 0 : index
      %125 = vector.load %arg15[%c0_75, %c0_76] : memref<8x128xf32, #tpu.memory_space<vmem>>, vector<8x128xf32>
      tpu.vector_store %arg15[%c0_75, %c0_76], %118 {strides = array<i32>} : memref<8x128xf32, #tpu.memory_space<vmem>>, vector<8x128xf32>,
    } else {
    }
    %c0 = arith.constant 0 : index
    %c0_1 = arith.constant 0 : index
    %3 = vector.load %arg15[%c0, %c0_1] : memref<8x128xf32, #tpu.memory_space<vmem>>, vector<8x128xf32>
    %c0_2 = arith.constant 0 : index
    %c0_3 = arith.constant 0 : index
    %4 = vector.load %arg9[%c0_2, %c0_3] : memref<128x128xf32, #tpu.memory_space<vmem>>, vector<128x128xf32>
    %cst = arith.constant dense<0.000000e+00> : vector<8x128xf32>
    %5 = tpu.matmul %3, %4, %cst {dimension_numbers = #tpu.dot_dimension_numbers<[1], [0], [0], [1], [0, 0, 1, 1], [], []>} : vector<8x128xf32>, vector<128x128xf32>, vector<8x128xf32> -> vector<8x128xf32>
    %c0_4 = arith.constant 0 : index
    %c0_5 = arith.constant 0 : index
    %6 = vector.load %arg10[%c0_4, %c0_5] : memref<1x128xf32, #tpu.memory_space<vmem>>, vector<1x128xf32>
    %7 = vector.broadcast %6 : vector<1x128xf32> to vector<8x128xf32>
    %8 = arith.addf %5, %7 : vector<8x128xf32>
    %c0_6 = arith.constant 0 : index
    %c0_7 = arith.constant 0 : index
    %9 = vector.load %arg11[%c0_6, %c0_7] : memref<8x128xf32, #tpu.memory_space<vmem>>, vector<8x128xf32>
    tpu.vector_store %arg11[%c0_6, %c0_7], %8 {strides = array<i32>} : memref<8x128xf32, #tpu.memory_space<vmem>>, vector<8x128xf32>,
    return
  }
  func.func @transform_0(%arg0: i32) -> i32 {
    %c0_i32 = arith.constant 0 : i32
    %c0_i32_0 = arith.constant 0 : i32
    return %c0_i32 : i32
  }
  func.func @transform_1(%arg0: i32) -> (i32, i32) {
    %c0_i32 = arith.constant 0 : i32
    %c0_i32_0 = arith.constant 0 : i32
    %c0_i32_1 = arith.constant 0 : i32
    return %c0_i32, %c0_i32_0 : i32, i32
  }
  func.func @transform_2(%arg0: i32) -> (i32, i32, i32) {
    %c0_i32 = arith.constant 0 : i32
    %c0_i32_0 = arith.constant 0 : i32
    %c0_i32_1 = arith.constant 0 : i32
    %c0_i32_2 = arith.constant 0 : i32
    return %c0_i32, %c0_i32_0, %c0_i32_1 : i32, i32, i32
  }
  func.func @transform_3(%arg0: i32) -> (i32, i32, i32) {
    %c0_i32 = arith.constant 0 : i32
    %c0_i32_0 = arith.constant 0 : i32
    %c0_i32_1 = arith.constant 0 : i32
    %c0_i32_2 = arith.constant 0 : i32
    return %c0_i32, %c0_i32_0, %c0_i32_1 : i32, i32, i32
  }
  func.func @transform_4(%arg0: i32) -> (i32, i32) {
    %c0_i32 = arith.constant 0 : i32
    %c0_i32_0 = arith.constant 0 : i32
    %c0_i32_1 = arith.constant 0 : i32
    return %c0_i32, %c0_i32_0 : i32, i32
  }
  func.func @transform_5(%arg0: i32) -> (i32, i32) {
    %c0_i32 = arith.constant 0 : i32
    %c0_i32_0 = arith.constant 0 : i32
    %c0_i32_1 = arith.constant 0 : i32
    return %c0_i32, %c0_i32_0 : i32, i32
  }
  func.func @transform_6(%arg0: i32) -> (i32, i32) {
    %c0_i32 = arith.constant 0 : i32
    %c0_i32_0 = arith.constant 0 : i32
    %c0_i32_1 = arith.constant 0 : i32
    return %c0_i32, %c0_i32_0 : i32, i32
  }
  func.func @transform_7(%arg0: i32) -> (i32, i32) {
    %c0_i32 = arith.constant 0 : i32
    %c0_i32_0 = arith.constant 0 : i32
    %c0_i32_1 = arith.constant 0 : i32
    return %c0_i32, %c0_i32_0 : i32, i32
  }
  func.func @transform_8(%arg0: i32) -> (i32, i32) {
    %c0_i32 = arith.constant 0 : i32
    %c0_i32_0 = arith.constant 0 : i32
    return %c0_i32, %arg0 : i32, i32
  }
  func.func @transform_9(%arg0: i32) -> (i32, i32) {
    %c0_i32 = arith.constant 0 : i32
    %c0_i32_0 = arith.constant 0 : i32
    return %c0_i32, %arg0 : i32, i32
  }
  func.func @transform_10(%arg0: i32) -> (i32, i32) {
    %c0_i32 = arith.constant 0 : i32
    %c0_i32_0 = arith.constant 0 : i32
    return %c0_i32, %arg0 : i32, i32
  }
  func.func @transform_11(%arg0: i32) -> (i32, i32, i32) {
    %c0_i32 = arith.constant 0 : i32
    %c0_i32_0 = arith.constant 0 : i32
    %c0_i32_1 = arith.constant 0 : i32
    %c0_i32_2 = arith.constant 0 : i32
    return %c0_i32, %c0_i32_0, %c0_i32_1 : i32, i32, i32
  }
  func.func @transform_12(%arg0: i32) -> (i32, i32, i32) {
    %c0_i32 = arith.constant 0 : i32
    %c0_i32_0 = arith.constant 0 : i32
    %c0_i32_1 = arith.constant 0 : i32
    %c0_i32_2 = arith.constant 0 : i32
    return %c0_i32, %c0_i32_0, %c0_i32_1 : i32, i32, i32
  }
}

</mosaic_0001>

<bundles_post_ra>
// kernel: tpu_custom_call.1
= control target key start
LH: loop header
LB: loop body
LE: loop exit
PB: predicated region body
PF: predicated region fallthrough
CT: control target
= control target key end

     0   :  { %18 = vsyncpa [#allocation7], 0  ;;  %s1459_s0 = inlined_call_operand.vmem [shape: s32[8], index: 0, kind: input, shape index: {}]   ;;  %s1460_s1 = inlined_call_operand.vmem [shape: f32[64,128], index: 1, kind: input, shape index: {}]   ;;  %s1461_s2 = inlined_call_operand.hbm [shape: f32[2,8,128], index: 2, kind: input, shape index: {}, may-alias: {2,11}]   ;;  %s1462_s3 = inlined_call_operand.hbm [shape: f32[2,8,128], index: 3, kind: input, shape index: {}, may-alias: {3,12}]   ;;  %s1463_s4 = inlined_call_operand.hbm [shape: f32[256,512], index: 4, kind: input, shape index: {}]   ;;  %s1464_s5 = inlined_call_operand.vmem [shape: f32[1,512], index: 5, kind: input, shape index: {}]   ;;  %s1465_s6 = inlined_call_operand.hbm [shape: f32[256,512], index: 6, kind: input, shape index: {}]   ;;  %s1466_s7 = inlined_call_operand.vmem [shape: f32[1,512], index: 7, kind: input, shape index: {}]   ;;  %s1467_s8 = inlined_call_operand.hbm [shape: f32[128,128], index: 8, kind: input, shape index: {}]   ;;  %s1468_s9 = inlined_call_operand.vmem [shape: f32[1,128], index: 9, kind: input, shape index: {}]   ;;  %s1469_s10 = inlined_call_operand.hbm [shape: f32[8,128], index: 10, kind: output, shape index: {0}]   ;;  %s1470_s11 = inlined_call_operand.hbm [shape: f32[2,8,128], index: 11, kind: output, shape index: {1}, may-alias: {2,11}]   ;;  %s1471_s12 = inlined_call_operand.hbm [shape: f32[2,8,128], index: 12, kind: output, shape index: {2}, may-alias: {3,12}]  }
   0x1   :  { %19 = vsyncpa [#allocation5], 0 }
   0x2   :  { %20 = vsyncpa [#allocation10], 0 }
   0x3   :  { %21 = vsyncpa [#allocation13], 0 }
   0x4   :  { %22 = vsyncpa [#allocation6], 0 }
   0x5   :  { %23 = vsyncpa [#allocation17], 0  ;;  %s1252_s21 = smov [#allocation9]  }
   0x6   :  { %s53_s22 = sshll.u32 %s1252_s21, 4  ;;  %s54_s22 = int_to_ptr.vmem [resolvable:$true] %s53_s22 }
   0x7   :  { %s1076_s23 = scalar_lea.vmem %s54_s22, 256  ;;  %p1081_p1 = scmp.lt.s32.totalorder %s54_s22, %s54_s22 }
   0x8   :  { %p1077_p0 = scmp.ne.s32.totalorder %s54_s22, %s1076_s23  ;;  %p1082_p2 = scmp.lt.s32.totalorder %s1076_s23, %s1076_s23 }
   0xa   :  { %p1083_p3 = por %p1082_p2, %p1081_p1 }
   0xc   :  { %p1084_p4 = pnand %p1083_p3, %p1077_p0 }
   0xe   :  { %1087 = shalt.err (!%p1084_p4)
}
   0xf   :  { %s1253_s24 = smov 128   ;;  %s1254_s25 = smov 8  }
  0x10   :  { %59 = dma.hbm_to_vmem [thread:$0]  %s1462_s3, 256, %s54_s22, [#allocation10], %s1253_s24, %s1253_s24, %s1254_s25  }
  0x11   :  { %s1255_s28 = smov [#allocation12]   ;;  %s30_s14 = sshll.u32 %s1459_s0, 4  ;;  %s31_s14 = int_to_ptr.vmem [resolvable:$true] %s30_s14 }
  0x12   :  { %s79_s29 = sshll.u32 %s1255_s28, 4  ;;  %s80_s29 = int_to_ptr.vmem [resolvable:$true] %s79_s29 }
  0x13   :  { %s1096_s15 = scalar_lea.vmem %s80_s29, 16384  ;;  %p1101_p6 = scmp.lt.s32.totalorder %s80_s29, %s80_s29 }
  0x14   :  { %p1097_p5 = scmp.ne.s32.totalorder %s80_s29, %s1096_s15  ;;  %p1102_p7 = scmp.lt.s32.totalorder %s1096_s15, %s1096_s15 }
  0x16   :  { %p1103_p8 = por %p1102_p7, %p1101_p6 }
  0x18   :  { %p1104_p9 = pnand %p1103_p8, %p1097_p5 }
  0x1a   :  { %1107 = shalt.err (!%p1104_p9)
}
  0x1b   :  { %s1256_s16 = smov 512   ;;  %s1257_s17 = smov 32  }
  0x1c   :  { %85 = dma.hbm_to_vmem [thread:$0]  %s1465_s6, 16384, %s80_s29, [#allocation13], %s1256_s16, %s1256_s16, %s1257_s17  }
  0x1d   :  { %s1108_s19 = scalar_lea.vmem %s31_s14, 16  ;;  %p1113_p11 = scmp.lt.s32.totalorder %s31_s14, %s31_s14 }
  0x1e   :  { %p1109_p10 = scmp.ne.s32.totalorder %s31_s14, %s1108_s19  ;;  %p1114_p12 = scmp.lt.s32.totalorder %s1108_s19, %s1108_s19 }
  0x20   :  { %p1115_p13 = por %p1114_p12, %p1113_p11 }
  0x22   :  { %p1116_p0 = pnand %p1115_p13, %p1109_p10 }
  0x24   :  { %1119 = shalt.err (!%p1116_p0)
}
  0x25   :  { %s1258_s0 = smov [#allocation4]   ;;  %s1259_s20 = smov [#allocation8]  }
  0x26   :  { %33 = dma.vmem_to_smem %s31_s14, 16, %s1258_s0, [#allocation7]  }
  0x27   :  { %s41_s21 = sshll.u32 %s1259_s20, 4  ;;  %s1260_s22 = smov [#allocation11]   ;;  %s42_s21 = int_to_ptr.vmem [resolvable:$true] %s41_s21 }
  0x28   :  { %s65_s23 = sshll.u32 %s1260_s22, 4  ;;  %s1128_s26 = scalar_lea.vmem %s42_s21, 256  ;;  %s66_s23 = int_to_ptr.vmem [resolvable:$true] %s65_s23 }
  0x29   :  { %p1129_p1 = scmp.ne.s32.totalorder %s42_s21, %s1128_s26  ;;  %p1133_p2 = scmp.lt.s32.totalorder %s42_s21, %s42_s21 }
  0x2a   :  { %p1134_p3 = scmp.lt.s32.totalorder %s1128_s26, %s1128_s26 }
  0x2c   :  { %p1135_p4 = por %p1134_p3, %p1133_p2 }
  0x2e   :  { %p1136_p5 = pnand %p1135_p4, %p1129_p1 }
  0x30   :  { %1139 = shalt.err (!%p1136_p5)
}
  0x31   :  { %47 = dma.hbm_to_vmem [thread:$0]  %s1461_s2, 256, %s42_s21, [#allocation5], %s1253_s24, %s1253_s24, %s1254_s25  }
  0x32   :  { %s1148_s28 = scalar_lea.vmem %s66_s23, 16384  ;;  %p1153_p7 = scmp.lt.s32.totalorder %s66_s23, %s66_s23 }
  0x33   :  { %p1149_p6 = scmp.ne.s32.totalorder %s66_s23, %s1148_s28  ;;  %p1154_p8 = scmp.lt.s32.totalorder %s1148_s28, %s1148_s28 }
  0x35   :  { %p1155_p9 = por %p1154_p8, %p1153_p7 }
  0x37   :  { %p1156_p10 = pnand %p1155_p9, %p1149_p6 }
  0x39   :  { %1159 = shalt.err (!%p1156_p10)
}
  0x3a   :  { %71 = dma.hbm_to_vmem [thread:$0]  %s1463_s4, 16384, %s66_s23, [#allocation10], %s1256_s16, %s1256_s16, %s1257_s17  }
  0x3b   :  { %s1261_s13 = smov [#allocation14]  }
  0x3c   :  { %s93_s14 = sshll.u32 %s1261_s13, 4  ;;  %s94_s14 = int_to_ptr.vmem [resolvable:$true] %s93_s14 }
  0x3d   :  { %s1168_s15 = scalar_lea.vmem %s94_s14, 2048  ;;  %p1173_p12 = scmp.lt.s32.totalorder %s94_s14, %s94_s14 }
  0x3e   :  { %p1169_p11 = scmp.ne.s32.totalorder %s94_s14, %s1168_s15  ;;  %p1174_p13 = scmp.lt.s32.totalorder %s1168_s15, %s1168_s15 }
  0x40   :  { %p1175_p0 = por %p1174_p13, %p1173_p12 }
  0x42   :  { %p1176_p1 = pnand %p1175_p0, %p1169_p11 }
  0x44   :  { %1179 = shalt.err (!%p1176_p1)
}
  0x45   :  { %99 = dma.hbm_to_vmem [thread:$0]  %s1467_s8, 2048, %s94_s14, [#allocation13], %s1253_s24, %s1253_s24, %s1254_s25  }
  0x46   :  { %1240 = dma.done.wait [#allocation7], 16  }
  0x47   :  { %1241 = vsyncadd [#allocation7], 4294967280 }
  0x48   :  { %1242 = dma.done.wait [#allocation5], 256  }
  0x49   :  { %1243 = vsyncadd [#allocation5], 4294967040 }
  0x4a   :  { %1244 = dma.done.wait [#allocation10], 16640  }
  0x4b   :  { %1245 = vsyncadd [#allocation10], 4294950656 }
  0x4c   :  { %1246 = dma.done.wait [#allocation13], 18432  }
  0x4d   :  { %1247 = vsyncadd [#allocation13], 4294948864 }
  0x4e   :  { %120 = sfence }
  0x4f   :  { %v221_v0 = vld [vmem:[#allocation11 + $0x1e8] sm:$0xff]  ;;  %v220_v1 = vld [vmem:[#allocation11 + $0x1e0] sm:$0xff]  ;;  %v223_v8 = vld [vmem:[#allocation11 + $0x1f8] sm:$0xff]  ;;  %s1365_s4 = sld [smem:[#allocation4]]  ;;  %vm1263_vm0 = vmmov 0  }
  0x50   :  { %v217_v2 = vld [vmem:[#allocation11 + $0x1c8] sm:$0xff]  ;;  %310 = vmatprep.subr.mxu0 %v221_v0  ;;  %v216_v3 = vld [vmem:[#allocation11 + $0x1c0] sm:$0xff]  ;;  %381 = vmatprep.subr.mxu1 %v223_v8  ;;  %v222_v10 = vld [vmem:[#allocation11 + $0x1f0] sm:$0xff]  ;;  %s1367_s8 = sld [smem:[#allocation4 + $0x1]] }
  0x51   :  { %311 = vmatpush1.msra.mxu0 %v220_v1  ;;  %v213_v4 = vld [vmem:[#allocation11 + $0x1a8] sm:$0xff]  ;;  %v212_v5 = vld [vmem:[#allocation11 + $0x1a0] sm:$0xff]  ;;  %382 = vmatpush1.msra.mxu1 %v222_v10  ;;  %v219_v12 = vld [vmem:[#allocation11 + $0x1d8] sm:$0xff]  ;;  %s1369_s16 = sld [smem:[#allocation4 + $0x2]] }
  0x52   :  { %312 = vmatprep.subr.mxu0 %v217_v2  ;;  %v209_v6 = vld [vmem:[#allocation11 + $0x188] sm:$0xff]  ;;  %v208_v7 = vld [vmem:[#allocation11 + $0x180] sm:$0xff]  ;;  %v218_v13 = vld [vmem:[#allocation11 + $0x1d0] sm:$0xff]  ;;  %383 = vmatprep.subr.mxu1 %v219_v12  ;;  %s1371_s17 = sld [smem:[#allocation4 + $0x3]] }
  0x53   :  { %313 = vmatpush1.msra.mxu0 %v216_v3  ;;  %v205_v9 = vld [vmem:[#allocation11 + $0x168] sm:$0xff]  ;;  %v204_v11 = vld [vmem:[#allocation11 + $0x160] sm:$0xff]  ;;  %v215_v15 = vld [vmem:[#allocation11 + $0x1b8] sm:$0xff]  ;;  %384 = vmatpush1.msra.mxu1 %v218_v13  ;;  %s1373_s18 = sld [smem:[#allocation4 + $0x4]] }
  0x54   :  { %314 = vmatprep.subr.mxu0 %v213_v4  ;;  %v201_v14 = vld [vmem:[#allocation11 + $0x148] sm:$0xff]  ;;  %v200_v16 = vld [vmem:[#allocation11 + $0x140] sm:$0xff]  ;;  %v214_v17 = vld [vmem:[#allocation11 + $0x1b0] sm:$0xff]  ;;  %385 = vmatprep.subr.mxu1 %v215_v15  ;;  %s1375_s19 = sld [smem:[#allocation4 + $0x5]] }
  0x55   :  { %315 = vmatpush1.msra.mxu0 %v212_v5  ;;  %v211_v18 = vld [vmem:[#allocation11 + $0x198] sm:$0xff]  ;;  %v197_v19 = vld [vmem:[#allocation11 + $0x128] sm:$0xff]  ;;  %v210_v20 = vld [vmem:[#allocation11 + $0x190] sm:$0xff]  ;;  %386 = vmatpush1.msra.mxu1 %v214_v17  ;;  %s1377_s0 = sld [smem:[#allocation4 + $0x6]]  ;;  %s126_s23 = scalar_lea.vmem %s1460_s1, %s1365_s4 }
  0x56   :  { %316 = vmatprep.subr.mxu0 %v209_v6  ;;  %v196_v21 = vld [vmem:[#allocation11 + $0x120] sm:$0xff]  ;;  %v207_v22 = vld [vmem:[#allocation11 + $0x178] sm:$0xff]  ;;  %v193_v23 = vld [vmem:[#allocation11 + $0x108] sm:$0xff]  ;;  %387 = vmatprep.subr.mxu1 %v211_v18  ;;  %s1379_s20 = sld [smem:[#allocation4 + $0x7]]  ;;  %s130_s27 = scalar_lea.vmem %s1460_s1, %s1367_s8 }
  0x57   :  { %317 = vmatpush1.msra.mxu0 %v208_v7  ;;  %v206_v24 = vld [vmem:[#allocation11 + $0x170] sm:$0xff]  ;;  %v192_v25 = vld [vmem:[#allocation11 + $0x100] sm:$0xff]  ;;  %388 = vmatpush1.msra.mxu1 %v210_v20  ;;  %v203_v26 = vld [vmem:[#allocation11 + $0x158] sm:$0xff]  ;;  %s134_s30 = scalar_lea.vmem %s1460_s1, %s1369_s16 }
  0x58   :  { %318 = vmatprep.subr.mxu0 %v205_v9  ;;  %v189_v27 = vld [vmem:[#allocation11 + $0xe8] sm:$0xff]  ;;  %389 = vmatprep.subr.mxu1 %v207_v22  ;;  %v202_v28 = vld [vmem:[#allocation11 + $0x150] sm:$0xff]  ;;  %v188_v29 = vld [vmem:[#allocation11 + $0xe0] sm:$0xff]  ;;  %s138_s15 = scalar_lea.vmem %s1460_s1, %s1371_s17 }
  0x59   :  { %319 = vmatpush1.msra.mxu0 %v204_v11  ;;  %390 = vmatpush1.msra.mxu1 %v206_v24  ;;  %v199_v30 = vld [vmem:[#allocation11 + $0x138] sm:$0xff]  ;;  %v185_v31 = vld [vmem:[#allocation11 + $0xc8] sm:$0xff]  ;;  %v198_v32 = vld [vmem:[#allocation11 + $0x130] sm:$0xff]  ;;  %s142_s4 = scalar_lea.vmem %s1460_s1, %s1373_s18 }
  0x5a   :  { %320 = vmatprep.subr.mxu0 %v201_v14  ;;  %391 = vmatprep.subr.mxu1 %v203_v26  ;;  %v184_v33 = vld [vmem:[#allocation11 + $0xc0] sm:$0xff]  ;;  %v195_v34 = vld [vmem:[#allocation11 + $0x118] sm:$0xff]  ;;  %v181_v35 = vld [vmem:[#allocation11 + $0xa8] sm:$0xff]  ;;  %s146_s21 = scalar_lea.vmem %s1460_s1, %s1375_s19 }
  0x5b   :  { %321 = vmatpush1.msra.mxu0 %v200_v16  ;;  %392 = vmatpush1.msra.mxu1 %v202_v28  ;;  %v194_v36 = vld [vmem:[#allocation11 + $0x110] sm:$0xff]  ;;  %v180_v37 = vld [vmem:[#allocation11 + $0xa0] sm:$0xff]  ;;  %v191_v38 = vld [vmem:[#allocation11 + $0xf8] sm:$0xff]  ;;  %s150_s6 = scalar_lea.vmem %s1460_s1, %s1377_s0 }
  0x5c   :  { %322 = vmatprep.subr.mxu0 %v197_v19  ;;  %393 = vmatprep.subr.mxu1 %v199_v30  ;;  %v177_v39 = vld [vmem:[#allocation11 + $0x88] sm:$0xff]  ;;  %v190_v40 = vld [vmem:[#allocation11 + $0xf0] sm:$0xff]  ;;  %v176_v41 = vld [vmem:[#allocation11 + $0x80] sm:$0xff]  ;;  %s154_s28 = scalar_lea.vmem %s1460_s1, %s1379_s20 }
  0x5d   :  { %323 = vmatpush1.msra.mxu0 %v196_v21  ;;  %394 = vmatpush1.msra.mxu1 %v198_v32  ;;  %v187_v42 = vld [vmem:[#allocation11 + $0xd8] sm:$0xff]  ;;  %v173_v43 = vld [vmem:[#allocation11 + $0x68] sm:$0xff]  ;;  %v186_v44 = vld [vmem:[#allocation11 + $0xd0] sm:$0xff] }
  0x5e   :  { %324 = vmatprep.subr.mxu0 %v193_v23  ;;  %395 = vmatprep.subr.mxu1 %v195_v34  ;;  %v172_v45 = vld [vmem:[#allocation11 + $0x60] sm:$0xff]  ;;  %v183_v46 = vld [vmem:[#allocation11 + $0xb8] sm:$0xff]  ;;  %v169_v47 = vld [vmem:[#allocation11 + $0x48] sm:$0xff] }
  0x5f   :  { %325 = vmatpush1.msra.mxu0 %v192_v25  ;;  %396 = vmatpush1.msra.mxu1 %v194_v36  ;;  %v182_v48 = vld [vmem:[#allocation11 + $0xb0] sm:$0xff]  ;;  %v168_v49 = vld [vmem:[#allocation11 + $0x40] sm:$0xff]  ;;  %v179_v50 = vld [vmem:[#allocation11 + $0x98] sm:$0xff] }
  0x60   :  { %326 = vmatprep.subr.mxu0 %v189_v27  ;;  %397 = vmatprep.subr.mxu1 %v191_v38  ;;  %v165_v51 = vld [vmem:[#allocation11 + $0x28] sm:$0xff]  ;;  %v178_v52 = vld [vmem:[#allocation11 + $0x90] sm:$0xff]  ;;  %v164_v53 = vld [vmem:[#allocation11 + $0x20] sm:$0xff] }
  0x61   :  { %327 = vmatpush1.msra.mxu0 %v188_v29  ;;  %398 = vmatpush1.msra.mxu1 %v190_v40  ;;  %v175_v54 = vld [vmem:[#allocation11 + $0x78] sm:$0xff]  ;;  %v161_v55 = vld [vmem:[#allocation11 + $0x8] sm:$0xff]  ;;  %v174_v56 = vld [vmem:[#allocation11 + $0x70] sm:$0xff] }
  0x62   :  { %328 = vmatprep.subr.mxu0 %v185_v31  ;;  %399 = vmatprep.subr.mxu1 %v187_v42  ;;  %v160_v57 = vld [vmem:[#allocation11] sm:$0xff]  ;;  %v171_v58 = vld [vmem:[#allocation11 + $0x58] sm:$0xff]  ;;  %v285_v59 = vld [vmem:[#allocation11 + $0x3e8] sm:$0xff] }
  0x63   :  { %329 = vmatpush1.msra.mxu0 %v184_v33  ;;  %400 = vmatpush1.msra.mxu1 %v186_v44  ;;  %v170_v60 = vld [vmem:[#allocation11 + $0x50] sm:$0xff]  ;;  %v284_v61 = vld [vmem:[#allocation11 + $0x3e0] sm:$0xff]  ;;  %v167_v62 = vld [vmem:[#allocation11 + $0x38] sm:$0xff] }
  0x64   :  { %330 = vmatprep.subr.mxu0 %v181_v35  ;;  %401 = vmatprep.subr.mxu1 %v183_v46  ;;  %v281_v63 = vld [vmem:[#allocation11 + $0x3c8] sm:$0xff]  ;;  %v166_v0 = vld [vmem:[#allocation11 + $0x30] sm:$0xff]  ;;  %v280_v1 = vld [vmem:[#allocation11 + $0x3c0] sm:$0xff] }
  0x65   :  { %331 = vmatpush1.msra.mxu0 %v180_v37  ;;  %402 = vmatpush1.msra.mxu1 %v182_v48  ;;  %v163_v2 = vld [vmem:[#allocation11 + $0x18] sm:$0xff]  ;;  %v277_v3 = vld [vmem:[#allocation11 + $0x3a8] sm:$0xff]  ;;  %v276_v4 = vld [vmem:[#allocation11 + $0x3a0] sm:$0xff] }
  0x66   :  { %332 = vmatprep.subr.mxu0 %v177_v39  ;;  %403 = vmatprep.subr.mxu1 %v179_v50  ;;  %v162_v5 = vld [vmem:[#allocation11 + $0x10] sm:$0xff]  ;;  %v273_v6 = vld [vmem:[#allocation11 + $0x388] sm:$0xff]  ;;  %v272_v7 = vld [vmem:[#allocation11 + $0x380] sm:$0xff] }
  0x67   :  { %333 = vmatpush1.msra.mxu0 %v176_v41  ;;  %404 = vmatpush1.msra.mxu1 %v178_v52  ;;  %v287_v8 = vld [vmem:[#allocation11 + $0x3f8] sm:$0xff]  ;;  %v269_v9 = vld [vmem:[#allocation11 + $0x368] sm:$0xff]  ;;  %v286_v10 = vld [vmem:[#allocation11 + $0x3f0] sm:$0xff] }
  0x68   :  { %334 = vmatprep.subr.mxu0 %v173_v43  ;;  %405 = vmatprep.subr.mxu1 %v175_v54  ;;  %v283_v11 = vld [vmem:[#allocation11 + $0x3d8] sm:$0xff]  ;;  %v268_v12 = vld [vmem:[#allocation11 + $0x360] sm:$0xff]  ;;  %v282_v13 = vld [vmem:[#allocation11 + $0x3d0] sm:$0xff] }
  0x69   :  { %335 = vmatpush1.msra.mxu0 %v172_v45  ;;  %406 = vmatpush1.msra.mxu1 %v174_v56  ;;  %v279_v14 = vld [vmem:[#allocation11 + $0x3b8] sm:$0xff]  ;;  %v265_v22 = vld [vmem:[#allocation11 + $0x348] sm:$0xff]  ;;  %v278_v23 = vld [vmem:[#allocation11 + $0x3b0] sm:$0xff] }
  0x6a   :  { %336 = vmatprep.subr.mxu0 %v169_v47  ;;  %407 = vmatprep.subr.mxu1 %v171_v58  ;;  %v127_v15 = vld [vmem:[%s126_s23] sm:$0x1]  ;;  %v264_v25 = vld [vmem:[#allocation11 + $0x340] sm:$0xff]  ;;  %v261_v27 = vld [vmem:[#allocation11 + $0x328] sm:$0xff] }
  0x6b   :  { %337 = vmatpush1.msra.mxu0 %v168_v49  ;;  %408 = vmatpush1.msra.mxu1 %v170_v60  ;;  %128 = vst [vmem:[#allocation2] sm:$0x1] %v127_v15  ;;  %v131_v16 = vld [vmem:[%s130_s27] sm:$0x1]  ;;  %v274_v28 = vld [vmem:[#allocation11 + $0x390] sm:$0xff]  ;;  %v260_v29 = vld [vmem:[#allocation11 + $0x320] sm:$0xff] }
  0x6c   :  { %338 = vmatprep.subr.mxu0 %v165_v51  ;;  %409 = vmatprep.subr.mxu1 %v167_v62  ;;  %v135_v17 = vld [vmem:[%s134_s30] sm:$0x1]  ;;  %132 = vst [vmem:[#allocation2 + $0x1] sm:$0x1] %v131_v16  ;;  %v257_v31 = vld [vmem:[#allocation11 + $0x308] sm:$0xff]  ;;  %v270_v32 = vld [vmem:[#allocation11 + $0x370] sm:$0xff] }
  0x6d   :  { %339 = vmatpush1.msra.mxu0 %v164_v53  ;;  %410 = vmatpush1.msra.mxu1 %v166_v0  ;;  %v139_v18 = vld [vmem:[%s138_s15] sm:$0x1]  ;;  %136 = vst [vmem:[#allocation2 + $0x2] sm:$0x1] %v135_v17  ;;  %v256_v33 = vld [vmem:[#allocation11 + $0x300] sm:$0xff]  ;;  %v253_v35 = vld [vmem:[#allocation11 + $0x2e8] sm:$0xff] }
  0x6e   :  { %340 = vmatprep.subr.mxu0 %v161_v55  ;;  %411 = vmatprep.subr.mxu1 %v163_v2  ;;  %140 = vst [vmem:[#allocation2 + $0x3] sm:$0x1] %v139_v18  ;;  %v143_v19 = vld [vmem:[%s142_s4] sm:$0x1]  ;;  %v266_v36 = vld [vmem:[#allocation11 + $0x350] sm:$0xff]  ;;  %v252_v37 = vld [vmem:[#allocation11 + $0x2e0] sm:$0xff] }
  0x6f   :  { %341 = vmatpush1.msra.mxu0 %v160_v57  ;;  %412 = vmatpush1.msra.mxu1 %v162_v5  ;;  %v147_v20 = vld [vmem:[%s146_s21] sm:$0x1]  ;;  %144 = vst [vmem:[#allocation2 + $0x4] sm:$0x1] %v143_v19  ;;  %v249_v39 = vld [vmem:[#allocation11 + $0x2c8] sm:$0xff]  ;;  %v262_v40 = vld [vmem:[#allocation11 + $0x330] sm:$0xff] }
  0x70   :  { %342 = vmatprep.subr.mxu0 %v285_v59  ;;  %413 = vmatprep.subr.mxu1 %v287_v8  ;;  %v151_v21 = vld [vmem:[%s150_s6] sm:$0x1]  ;;  %148 = vst [vmem:[#allocation2 + $0x5] sm:$0x1] %v147_v20  ;;  %v248_v41 = vld [vmem:[#allocation11 + $0x2c0] sm:$0xff]  ;;  %v245_v43 = vld [vmem:[#allocation11 + $0x2a8] sm:$0xff] }
  0x71   :  { %343 = vmatpush2.msra.mxu0 %v284_v61  ;;  %414 = vmatpush2.msra.mxu1 %v286_v10  ;;  %152 = vst [vmem:[#allocation2 + $0x6] sm:$0x1] %v151_v21  ;;  %v155_v24 = vld [vmem:[%s154_s28] sm:$0x1]  ;;  %v158_v44 = vld [vmem:[#allocation8] sm:$0xff]  ;;  %v258_v46 = vld [vmem:[#allocation11 + $0x310] sm:$0xff] }
  0x72   :  { %344 = vmatprep.subr.mxu0 %v281_v63  ;;  %415 = vmatprep.subr.mxu1 %v283_v11  ;;  %v275_v26 = vld [vmem:[#allocation11 + $0x398] sm:$0xff]  ;;  %156 = vst [vmem:[#allocation2 + $0x7] sm:$0x1] %v155_v24  ;;  %v244_v45 = vld [vmem:[#allocation11 + $0x2a0] sm:$0xff]  ;;  %v241_v47 = vld [vmem:[#allocation11 + $0x288] sm:$0xff] }
  0x73   :  { %345 = vmatpush2.msra.mxu0 %v280_v1  ;;  %416 = vmatpush2.msra.mxu1 %v282_v13  ;;  %v271_v30 = vld [vmem:[#allocation11 + $0x378] sm:$0xff]  ;;  %v240_v49 = vld [vmem:[#allocation11 + $0x280] sm:$0xff]  ;;  %v254_v50 = vld [vmem:[#allocation11 + $0x2f0] sm:$0xff] }
  0x74   :  { %346 = vmatprep.subr.mxu0 %v277_v3  ;;  %417 = vmatprep.subr.mxu1 %v279_v14  ;;  %v267_v34 = vld [vmem:[#allocation11 + $0x358] sm:$0xff]  ;;  %v237_v51 = vld [vmem:[#allocation11 + $0x268] sm:$0xff]  ;;  %v236_v53 = vld [vmem:[#allocation11 + $0x260] sm:$0xff] }
  0x75   :  { %347 = vmatpush2.msra.mxu0 %v276_v4  ;;  %418 = vmatpush2.msra.mxu1 %v278_v23  ;;  %v263_v38 = vld [vmem:[#allocation11 + $0x338] sm:$0xff]  ;;  %v250_v54 = vld [vmem:[#allocation11 + $0x2d0] sm:$0xff]  ;;  %v233_v55 = vld [vmem:[#allocation11 + $0x248] sm:$0xff] }
  0x76   :  { %348 = vmatprep.subr.mxu0 %v273_v6  ;;  %419 = vmatprep.subr.mxu1 %v275_v26  ;;  %v259_v42 = vld [vmem:[#allocation11 + $0x318] sm:$0xff]  ;;  %v232_v57 = vld [vmem:[#allocation11 + $0x240] sm:$0xff]  ;;  %v246_v58 = vld [vmem:[#allocation11 + $0x2b0] sm:$0xff] }
  0x77   :  { %349 = vmatpush2.msra.mxu0 %v272_v7  ;;  %420 = vmatpush2.msra.mxu1 %v274_v28  ;;  %v255_v48 = vld [vmem:[#allocation11 + $0x2f8] sm:$0xff]  ;;  %v229_v59 = vld [vmem:[#allocation11 + $0x228] sm:$0xff]  ;;  %v228_v61 = vld [vmem:[#allocation11 + $0x220] sm:$0xff] }
  0x78   :  { %350 = vmatprep.subr.mxu0 %v269_v9  ;;  %421 = vmatprep.subr.mxu1 %v271_v30  ;;  %v251_v52 = vld [vmem:[#allocation11 + $0x2d8] sm:$0xff]  ;;  %v242_v62 = vld [vmem:[#allocation11 + $0x290] sm:$0xff]  ;;  %v225_v63 = vld [vmem:[#allocation11 + $0x208] sm:$0xff] }
  0x79   :  { %351 = vmatpush2.msra.mxu0 %v268_v12  ;;  %422 = vmatpush2.msra.mxu1 %v270_v32  ;;  %v247_v56 = vld [vmem:[#allocation11 + $0x2b8] sm:$0xff]  ;;  %v224_v1 = vld [vmem:[#allocation11 + $0x200] sm:$0xff]  ;;  %v238_v2 = vld [vmem:[#allocation11 + $0x270] sm:$0xff] }
  0x7a   :  { %352 = vmatprep.subr.mxu0 %v265_v22  ;;  %423 = vmatprep.subr.mxu1 %v267_v34  ;;  %v243_v60 = vld [vmem:[#allocation11 + $0x298] sm:$0xff]  ;;  %v234_v5 = vld [vmem:[#allocation11 + $0x250] sm:$0xff]  ;;  %v543_v7 = vld [vmem:[#allocation12 + $0x1e8] sm:$0xff] }
  0x7b   :  { %353 = vmatpush2.msra.mxu0 %v264_v25  ;;  %424 = vmatpush2.msra.mxu1 %v266_v36  ;;  %v239_v0 = vld [vmem:[#allocation11 + $0x278] sm:$0xff]  ;;  %v230_v8 = vld [vmem:[#allocation11 + $0x230] sm:$0xff]  ;;  %v542_v9 = vld [vmem:[#allocation12 + $0x1e0] sm:$0xff] }
  0x7c   :  { %354 = vmatprep.subr.mxu0 %v261_v27  ;;  %425 = vmatprep.subr.mxu1 %v263_v38  ;;  %v157_v3 = vld [vmem:[#allocation2] sm:$0xff]  ;;  %v539_v11 = vld [vmem:[#allocation12 + $0x1c8] sm:$0xff]  ;;  %v226_v12 = vld [vmem:[#allocation11 + $0x210] sm:$0xff] }
  0x7d   :  { %355 = vmatpush2.msra.mxu0 %v260_v29  ;;  %426 = vmatpush2.msra.mxu1 %v262_v40  ;;  %v235_v4 = vld [vmem:[#allocation11 + $0x258] sm:$0xff]  ;;  %v538_v13 = vld [vmem:[#allocation12 + $0x1c0] sm:$0xff]  ;;  %v544_v15 = vld [vmem:[#allocation12 + $0x1f0] sm:$0xff] }
  0x7e   :  { %356 = vmatprep.subr.mxu0 %v257_v31  ;;  %427 = vmatprep.subr.mxu1 %v259_v42  ;;  %v231_v6 = vld [vmem:[#allocation11 + $0x238] sm:$0xff]  ;;  %v535_v16 = vld [vmem:[#allocation12 + $0x1a8] sm:$0xff]  ;;  %v534_v18 = vld [vmem:[#allocation12 + $0x1a0] sm:$0xff] }
  0x7f   :  { %357 = vmatpush2.msra.mxu0 %v256_v33  ;;  %374 = vmatprep.mubr.f32.mxu0 %v158_v44  ;;  %v227_v10 = vld [vmem:[#allocation11 + $0x218] sm:$0xff]  ;;  %v540_v19 = vld [vmem:[#allocation12 + $0x1d0] sm:$0xff]  ;;  %v531_v20 = vld [vmem:[#allocation12 + $0x188] sm:$0xff] }
  0x80   :  { %358 = vmatprep.subr.mxu0 %v253_v35  ;;  %428 = vmatpush2.msra.mxu1 %v258_v46  ;;  %v545_v14 = vld [vmem:[#allocation12 + $0x1f8] sm:$0xff]  ;;  %v536_v22 = vld [vmem:[#allocation12 + $0x1b0] sm:$0xff]  ;;  %v530_v24 = vld [vmem:[#allocation12 + $0x180] sm:$0xff] }
  0x81   :  { %359 = vmatpush2.msra.mxu0 %v252_v37  ;;  %429 = vmatprep.subr.mxu1 %v255_v48  ;;  %v541_v17 = vld [vmem:[#allocation12 + $0x1d8] sm:$0xff]  ;;  %v532_v25 = vld [vmem:[#allocation12 + $0x190] sm:$0xff]  ;;  %v527_v26 = vld [vmem:[#allocation12 + $0x168] sm:$0xff] }
  0x82   :  { %360 = vmatprep.subr.mxu0 %v249_v39  ;;  %430 = vmatpush2.msra.mxu1 %v254_v50  ;;  %v537_v21 = vld [vmem:[#allocation12 + $0x1b8] sm:$0xff]  ;;  %v526_v28 = vld [vmem:[#allocation12 + $0x160] sm:$0xff]  ;;  %v528_v29 = vld [vmem:[#allocation12 + $0x170] sm:$0xff] }
  0x83   :  { %361 = vmatpush2.msra.mxu0 %v248_v41  ;;  %431 = vmatprep.subr.mxu1 %v251_v52  ;;  %v533_v23 = vld [vmem:[#allocation12 + $0x198] sm:$0xff]  ;;  %v523_v30 = vld [vmem:[#allocation12 + $0x148] sm:$0xff]  ;;  %v522_v32 = vld [vmem:[#allocation12 + $0x140] sm:$0xff] }
  0x84   :  { %362 = vmatprep.subr.mxu0 %v245_v43  ;;  %432 = vmatpush2.msra.mxu1 %v250_v54  ;;  %v529_v27 = vld [vmem:[#allocation12 + $0x178] sm:$0xff]  ;;  %v524_v33 = vld [vmem:[#allocation12 + $0x150] sm:$0xff]  ;;  %v519_v34 = vld [vmem:[#allocation12 + $0x128] sm:$0xff] }
  0x85   :  { %363 = vmatpush2.msra.mxu0 %v244_v45  ;;  %433 = vmatprep.subr.mxu1 %v247_v56  ;;  %v525_v31 = vld [vmem:[#allocation12 + $0x158] sm:$0xff]  ;;  %v518_v36 = vld [vmem:[#allocation12 + $0x120] sm:$0xff]  ;;  %v520_v37 = vld [vmem:[#allocation12 + $0x130] sm:$0xff] }
  0x86   :  { %364 = vmatprep.subr.mxu0 %v241_v47  ;;  %434 = vmatpush2.msra.mxu1 %v246_v58  ;;  %v521_v35 = vld [vmem:[#allocation12 + $0x138] sm:$0xff]  ;;  %v515_v38 = vld [vmem:[#allocation12 + $0x108] sm:$0xff]  ;;  %v514_v40 = vld [vmem:[#allocation12 + $0x100] sm:$0xff] }
  0x87   :  { %365 = vmatpush2.msra.mxu0 %v240_v49  ;;  %435 = vmatprep.subr.mxu1 %v243_v60  ;;  %v517_v39 = vld [vmem:[#allocation12 + $0x118] sm:$0xff]  ;;  %v516_v41 = vld [vmem:[#allocation12 + $0x110] sm:$0xff]  ;;  %v511_v42 = vld [vmem:[#allocation12 + $0xe8] sm:$0xff] }
  0x88   :  { %366 = vmatprep.subr.mxu0 %v237_v51  ;;  %436 = vmatpush2.msra.mxu1 %v242_v62  ;;  %v513_v43 = vld [vmem:[#allocation12 + $0xf8] sm:$0xff]  ;;  %v512_v45 = vld [vmem:[#allocation12 + $0xf0] sm:$0xff]  ;;  %v507_v46 = vld [vmem:[#allocation12 + $0xc8] sm:$0xff] }
  0x89   :  { %367 = vmatpush2.msra.mxu0 %v236_v53  ;;  %437 = vmatprep.subr.mxu1 %v239_v0  ;;  %v509_v47 = vld [vmem:[#allocation12 + $0xd8] sm:$0xff]  ;;  %v506_v48 = vld [vmem:[#allocation12 + $0xc0] sm:$0xff]  ;;  %v508_v49 = vld [vmem:[#allocation12 + $0xd0] sm:$0xff] }
  0x8a   :  { %368 = vmatprep.subr.mxu0 %v233_v55  ;;  %438 = vmatpush2.msra.mxu1 %v238_v2  ;;  %v503_v50 = vld [vmem:[#allocation12 + $0xa8] sm:$0xff]  ;;  %v505_v51 = vld [vmem:[#allocation12 + $0xb8] sm:$0xff]  ;;  %v502_v52 = vld [vmem:[#allocation12 + $0xa0] sm:$0xff] }
  0x8b   :  { %369 = vmatpush2.msra.mxu0 %v232_v57  ;;  %439 = vmatprep.subr.mxu1 %v235_v4  ;;  %v504_v53 = vld [vmem:[#allocation12 + $0xb0] sm:$0xff]  ;;  %v499_v54 = vld [vmem:[#allocation12 + $0x88] sm:$0xff]  ;;  %v501_v55 = vld [vmem:[#allocation12 + $0x98] sm:$0xff] }
  0x8c   :  { %370 = vmatprep.subr.mxu0 %v229_v59  ;;  %440 = vmatpush2.msra.mxu1 %v234_v5  ;;  %v498_v56 = vld [vmem:[#allocation12 + $0x80] sm:$0xff]  ;;  %v500_v57 = vld [vmem:[#allocation12 + $0x90] sm:$0xff]  ;;  %v495_v58 = vld [vmem:[#allocation12 + $0x68] sm:$0xff] }
  0x8d   :  { %371 = vmatpush2.msra.mxu0 %v228_v61  ;;  %445 = vmatprep.mubr.f32.mxu1 %v158_v44  ;;  %v510_v44 = vld [vmem:[#allocation12 + $0xe0] sm:$0xff]  ;;  %v497_v59 = vld [vmem:[#allocation12 + $0x78] sm:$0xff]  ;;  %v496_v61 = vld [vmem:[#allocation12 + $0x70] sm:$0xff] }
  0x8e   :  { %372 = vmatprep.subr.mxu0 %v225_v63  ;;  %441 = vmatprep.subr.mxu1 %v231_v6  ;;  %v494_v60 = vld [vmem:[#allocation12 + $0x60] sm:$0xff]  ;;  %v491_v62 = vld [vmem:[#allocation12 + $0x48] sm:$0xff]  ;;  %v493_v63 = vld [vmem:[#allocation12 + $0x58] sm:$0xff] }
  0x8f   :  { %373 = vmatpush2.msra.mxu0 %v224_v1  ;;  %442 = vmatpush2.msra.mxu1 %v230_v8  ;;  %v490_v0 = vld [vmem:[#allocation12 + $0x40] sm:$0xff]  ;;  %v492_v1 = vld [vmem:[#allocation12 + $0x50] sm:$0xff]  ;;  %v487_v2 = vld [vmem:[#allocation12 + $0x28] sm:$0xff] }
  0x90   :  { %375 = vmatmul.mubr.f32.vlgmr.msra.gmra.mxu0 %v157_v3  ;;  %632 = vmatprep.subr.mxu0 %v543_v7  ;;  %v486_v4 = vld [vmem:[#allocation12 + $0x20] sm:$0xff]  ;;  %v488_v5 = vld [vmem:[#allocation12 + $0x30] sm:$0xff]  ;;  %v483_v6 = vld [vmem:[#allocation12 + $0x8] sm:$0xff] }
  0x91   :  { %633 = vmatpush1.msra.mxu0 %v542_v9  ;;  %443 = vmatprep.subr.mxu1 %v227_v10  ;;  %v485_v7 = vld [vmem:[#allocation12 + $0x18] sm:$0xff]  ;;  %v482_v8 = vld [vmem:[#allocation12] sm:$0xff]  ;;  %v484_v9 = vld [vmem:[#allocation12 + $0x10] sm:$0xff] }
  0x92   :  { %634 = vmatprep.subr.mxu0 %v539_v11  ;;  %444 = vmatpush2.msra.mxu1 %v226_v12  ;;  %v607_v10 = vld [vmem:[#allocation12 + $0x3e8] sm:$0xff]  ;;  %v609_v11 = vld [vmem:[#allocation12 + $0x3f8] sm:$0xff]  ;;  %v606_v12 = vld [vmem:[#allocation12 + $0x3e0] sm:$0xff] }
  0x93   :  { %635 = vmatpush1.msra.mxu0 %v538_v13  ;;  %446 = vmatmul.mubr.f32.vlgmr.msra.gmra.mxu1 %v157_v3  ;;  %v489_v3 = vld [vmem:[#allocation12 + $0x38] sm:$0xff]  ;;  %v608_v13 = vld [vmem:[#allocation12 + $0x3f0] sm:$0xff] }
  0x94   :  { %703 = vmatprep.subr.mxu1 %v545_v14  ;;  %636 = vmatprep.subr.mxu0 %v535_v16  ;;  %v603_v14 = vld [vmem:[#allocation12 + $0x3c8] sm:$0xff]  ;;  %v602_v16 = vld [vmem:[#allocation12 + $0x3c0] sm:$0xff] }
  0x95   :  { %704 = vmatpush1.msra.mxu1 %v544_v15  ;;  %637 = vmatpush1.msra.mxu0 %v534_v18  ;;  %v605_v15 = vld [vmem:[#allocation12 + $0x3d8] sm:$0xff]  ;;  %v599_v18 = vld [vmem:[#allocation12 + $0x3a8] sm:$0xff] }
  0x96   :  { %705 = vmatprep.subr.mxu1 %v541_v17  ;;  %638 = vmatprep.subr.mxu0 %v531_v20  ;;  %v604_v17 = vld [vmem:[#allocation12 + $0x3d0] sm:$0xff]  ;;  %v598_v20 = vld [vmem:[#allocation12 + $0x3a0] sm:$0xff] }
  0x97   :  { %706 = vmatpush1.msra.mxu1 %v540_v19  ;;  %639 = vmatpush1.msra.mxu0 %v530_v24  ;;  %v601_v19 = vld [vmem:[#allocation12 + $0x3b8] sm:$0xff]  ;;  %v594_v24 = vld [vmem:[#allocation12 + $0x380] sm:$0xff] }
  0x98   :  { %707 = vmatprep.subr.mxu1 %v537_v21  ;;  %640 = vmatprep.subr.mxu0 %v527_v26  ;;  %v600_v21 = vld [vmem:[#allocation12 + $0x3b0] sm:$0xff]  ;;  %v591_v26 = vld [vmem:[#allocation12 + $0x368] sm:$0xff] }
  0x99   :  { %708 = vmatpush1.msra.mxu1 %v536_v22  ;;  %641 = vmatpush1.msra.mxu0 %v526_v28  ;;  %v595_v22 = vld [vmem:[#allocation12 + $0x388] sm:$0xff]  ;;  %v590_v28 = vld [vmem:[#allocation12 + $0x360] sm:$0xff] }
  0x9a   :  { %709 = vmatprep.subr.mxu1 %v533_v23  ;;  %642 = vmatprep.subr.mxu0 %v523_v30  ;;  %v597_v23 = vld [vmem:[#allocation12 + $0x398] sm:$0xff]  ;;  %v587_v30 = vld [vmem:[#allocation12 + $0x348] sm:$0xff] }
  0x9b   :  { %710 = vmatpush1.msra.mxu1 %v532_v25  ;;  %643 = vmatpush1.msra.mxu0 %v522_v32  ;;  %v596_v25 = vld [vmem:[#allocation12 + $0x390] sm:$0xff]  ;;  %v586_v32 = vld [vmem:[#allocation12 + $0x340] sm:$0xff] }
  0x9c   :  { %711 = vmatprep.subr.mxu1 %v529_v27  ;;  %644 = vmatprep.subr.mxu0 %v519_v34  ;;  %v593_v27 = vld [vmem:[#allocation12 + $0x378] sm:$0xff]  ;;  %v583_v34 = vld [vmem:[#allocation12 + $0x328] sm:$0xff] }
  0x9d   :  { %712 = vmatpush1.msra.mxu1 %v528_v29  ;;  %645 = vmatpush1.msra.mxu0 %v518_v36  ;;  %v592_v29 = vld [vmem:[#allocation12 + $0x370] sm:$0xff]  ;;  %v582_v36 = vld [vmem:[#allocation12 + $0x320] sm:$0xff] }
  0x9e   :  { %713 = vmatprep.subr.mxu1 %v525_v31  ;;  %646 = vmatprep.subr.mxu0 %v515_v38  ;;  %v589_v31 = vld [vmem:[#allocation12 + $0x358] sm:$0xff]  ;;  %v579_v38 = vld [vmem:[#allocation12 + $0x308] sm:$0xff] }
  0x9f   :  { %714 = vmatpush1.msra.mxu1 %v524_v33  ;;  %647 = vmatpush1.msra.mxu0 %v514_v40  ;;  %v588_v33 = vld [vmem:[#allocation12 + $0x350] sm:$0xff]  ;;  %v578_v40 = vld [vmem:[#allocation12 + $0x300] sm:$0xff] }
  0xa0   :  { %715 = vmatprep.subr.mxu1 %v521_v35  ;;  %648 = vmatprep.subr.mxu0 %v511_v42  ;;  %v585_v35 = vld [vmem:[#allocation12 + $0x338] sm:$0xff]  ;;  %v575_v42 = vld [vmem:[#allocation12 + $0x2e8] sm:$0xff] }
  0xa1   :  { %716 = vmatpush1.msra.mxu1 %v520_v37  ;;  %649 = vmatpush1.msra.mxu0 %v510_v44  ;;  %v584_v37 = vld [vmem:[#allocation12 + $0x330] sm:$0xff]  ;;  %v574_v44 = vld [vmem:[#allocation12 + $0x2e0] sm:$0xff] }
  0xa2   :  { %717 = vmatprep.subr.mxu1 %v517_v39  ;;  %650 = vmatprep.subr.mxu0 %v507_v46  ;;  %v581_v39 = vld [vmem:[#allocation12 + $0x318] sm:$0xff]  ;;  %v571_v46 = vld [vmem:[#allocation12 + $0x2c8] sm:$0xff] }
  0xa3   :  { %718 = vmatpush1.msra.mxu1 %v516_v41  ;;  %651 = vmatpush1.msra.mxu0 %v506_v48  ;;  %v580_v41 = vld [vmem:[#allocation12 + $0x310] sm:$0xff]  ;;  %v570_v48 = vld [vmem:[#allocation12 + $0x2c0] sm:$0xff] }
  0xa4   :  { %719 = vmatprep.subr.mxu1 %v513_v43  ;;  %652 = vmatprep.subr.mxu0 %v503_v50  ;;  %v577_v43 = vld [vmem:[#allocation12 + $0x2f8] sm:$0xff]  ;;  %v567_v50 = vld [vmem:[#allocation12 + $0x2a8] sm:$0xff] }
  0xa5   :  { %720 = vmatpush1.msra.mxu1 %v512_v45  ;;  %653 = vmatpush1.msra.mxu0 %v502_v52  ;;  %v576_v45 = vld [vmem:[#allocation12 + $0x2f0] sm:$0xff]  ;;  %v566_v52 = vld [vmem:[#allocation12 + $0x2a0] sm:$0xff] }
  0xa6   :  { %721 = vmatprep.subr.mxu1 %v509_v47  ;;  %654 = vmatprep.subr.mxu0 %v499_v54  ;;  %v573_v47 = vld [vmem:[#allocation12 + $0x2d8] sm:$0xff]  ;;  %v563_v54 = vld [vmem:[#allocation12 + $0x288] sm:$0xff] }
  0xa7   :  { %722 = vmatpush1.msra.mxu1 %v508_v49  ;;  %655 = vmatpush1.msra.mxu0 %v498_v56  ;;  %v572_v49 = vld [vmem:[#allocation12 + $0x2d0] sm:$0xff]  ;;  %v562_v56 = vld [vmem:[#allocation12 + $0x280] sm:$0xff] }
  0xa8   :  { %723 = vmatprep.subr.mxu1 %v505_v51  ;;  %656 = vmatprep.subr.mxu0 %v495_v58  ;;  %v569_v51 = vld [vmem:[#allocation12 + $0x2b8] sm:$0xff]  ;;  %v559_v58 = vld [vmem:[#allocation12 + $0x268] sm:$0xff] }
  0xa9   :  { %724 = vmatpush1.msra.mxu1 %v504_v53  ;;  %657 = vmatpush1.msra.mxu0 %v494_v60  ;;  %v568_v53 = vld [vmem:[#allocation12 + $0x2b0] sm:$0xff]  ;;  %v558_v60 = vld [vmem:[#allocation12 + $0x260] sm:$0xff] }
  0xaa   :  { %725 = vmatprep.subr.mxu1 %v501_v55  ;;  %658 = vmatprep.subr.mxu0 %v491_v62  ;;  %v565_v55 = vld [vmem:[#allocation12 + $0x298] sm:$0xff]  ;;  %v555_v62 = vld [vmem:[#allocation12 + $0x248] sm:$0xff] }
  0xab   :  { %726 = vmatpush1.msra.mxu1 %v500_v57  ;;  %659 = vmatpush1.msra.mxu0 %v490_v0  ;;  %v564_v57 = vld [vmem:[#allocation12 + $0x290] sm:$0xff]  ;;  %v554_v0 = vld [vmem:[#allocation12 + $0x240] sm:$0xff] }
  0xac   :  { %727 = vmatprep.subr.mxu1 %v497_v59  ;;  %660 = vmatprep.subr.mxu0 %v487_v2  ;;  %v561_v59 = vld [vmem:[#allocation12 + $0x278] sm:$0xff]  ;;  %v551_v2 = vld [vmem:[#allocation12 + $0x228] sm:$0xff] }
  0xad   :  { %728 = vmatpush1.msra.mxu1 %v496_v61  ;;  %661 = vmatpush1.msra.mxu0 %v486_v4  ;;  %v560_v61 = vld [vmem:[#allocation12 + $0x270] sm:$0xff]  ;;  %v550_v4 = vld [vmem:[#allocation12 + $0x220] sm:$0xff] }
  0xae   :  { %729 = vmatprep.subr.mxu1 %v493_v63  ;;  %662 = vmatprep.subr.mxu0 %v483_v6  ;;  %v557_v63 = vld [vmem:[#allocation12 + $0x258] sm:$0xff]  ;;  %v547_v6 = vld [vmem:[#allocation12 + $0x208] sm:$0xff] }
  0xaf   :  { %730 = vmatpush1.msra.mxu1 %v492_v1  ;;  %663 = vmatpush1.msra.mxu0 %v482_v8  ;;  %v556_v1 = vld [vmem:[#allocation12 + $0x250] sm:$0xff]  ;;  %v546_v8 = vld [vmem:[#allocation12 + $0x200] sm:$0xff] }
  0xb0   :  { %731 = vmatprep.subr.mxu1 %v489_v3  ;;  %664 = vmatprep.subr.mxu0 %v607_v10  ;;  %v553_v3 = vld [vmem:[#allocation12 + $0x238] sm:$0xff]  ;;  %v548_v10 = vld [vmem:[#allocation12 + $0x210] sm:$0xff] }
  0xb1   :  { %732 = vmatpush1.msra.mxu1 %v488_v5  ;;  %665 = vmatpush2.msra.mxu0 %v606_v12  ;;  %v552_v5 = vld [vmem:[#allocation12 + $0x230] sm:$0xff] }
  0xb2   :  { %733 = vmatprep.subr.mxu1 %v485_v7  ;;  %666 = vmatprep.subr.mxu0 %v603_v14  ;;  %v549_v7 = vld [vmem:[#allocation12 + $0x218] sm:$0xff] }
  0xb3   :  { %734 = vmatpush1.msra.mxu1 %v484_v9  ;;  %667 = vmatpush2.msra.mxu0 %v602_v16  ;;  %v479_v9 = vld [vmem:[#allocation8 + $0x8] sm:$0xff]  ;;  %v288_v14 = vld [vmem:[%s1464_s5] sm:$0xf] }
  0xb4   :  { %735 = vmatprep.subr.mxu1 %v609_v11  ;;  %668 = vmatprep.subr.mxu0 %v599_v18  ;;  %v290_v11 = vlaneseq }
  0xb5   :  { %736 = vmatpush2.msra.mxu1 %v608_v13  ;;  %669 = vmatpush2.msra.mxu0 %v598_v20 }
  0xb6   :  { %737 = vmatprep.subr.mxu1 %v605_v15  ;;  %670 = vmatprep.subr.mxu0 %v595_v22  ;;  %v1413_v12 = vshrl.u32 %v290_v11, 7 }
  0xb7   :  { %738 = vmatpush2.msra.mxu1 %v604_v17  ;;  %671 = vmatpush2.msra.mxu0 %v594_v24 }
  0xb8   :  { %739 = vmatprep.subr.mxu1 %v601_v19  ;;  %672 = vmatprep.subr.mxu0 %v591_v26  ;;  %v292_v13 = vsub.s32 0, %v1413_v12  ;;  %v296_v15 = vsub.s32 1, %v1413_v12  ;;  %v300_v26 = vsub.s32 2, %v1413_v12 }
  0xb9   :  { %740 = vmatpush2.msra.mxu1 %v600_v21  ;;  %673 = vmatpush2.msra.mxu0 %v590_v28 }
  0xba   :  { %741 = vmatprep.subr.mxu1 %v597_v23  ;;  %674 = vmatprep.subr.mxu0 %v587_v30  ;;  %v293_v16 = vrot.slane %v288_v14, %v292_v13  ;;  %v297_v17 = vrot.slane %v288_v14, %v296_v15  ;;  %v304_v23 = vsub.s32 3, %v1413_v12 }
  0xbb   :  { %742 = vmatpush2.msra.mxu1 %v596_v25  ;;  %675 = vmatpush2.msra.mxu0 %v586_v32 }
  0xbc   :  { %743 = vmatprep.subr.mxu1 %v593_v27  ;;  %676 = vmatprep.subr.mxu0 %v583_v34  ;;  %v305_v27 = vrot.slane %v288_v14, %v304_v23 }
  0xbd   :  { %744 = vmatpush2.msra.mxu1 %v592_v29  ;;  %677 = vmatpush2.msra.mxu0 %v582_v36  ;;  %v301_v29 = vrot.slane %v288_v14, %v300_v26 }
  0xbe   :  { %745 = vmatprep.subr.mxu1 %v589_v31  ;;  %678 = vmatprep.subr.mxu0 %v579_v38 }
  0xbf   :  { %746 = vmatpush2.msra.mxu1 %v588_v33  ;;  %679 = vmatpush2.msra.mxu0 %v578_v40  ;;  %v159_v40 = vld [vmem:[#allocation9] sm:$0xff] }
  0xc0   :  { %747 = vmatprep.subr.mxu1 %v585_v35  ;;  %680 = vmatprep.subr.mxu0 %v575_v42 }
  0xc1   :  { %748 = vmatpush2.msra.mxu1 %v584_v37  ;;  %681 = vmatpush2.msra.mxu0 %v574_v44 }
  0xc2   :  { %749 = vmatprep.subr.mxu1 %v581_v39  ;;  %682 = vmatprep.subr.mxu0 %v571_v46 }
  0xc3   :  { %750 = vmatpush2.msra.mxu1 %v580_v41  ;;  %683 = vmatpush2.msra.mxu0 %v570_v48 }
  0xc4   :  { %751 = vmatprep.subr.mxu1 %v577_v43  ;;  %684 = vmatprep.subr.mxu0 %v567_v50  ;;  %v819_v50 = vld [vmem:[#allocation14 + $0x78] sm:$0xff] }
  0xc5   :  { %752 = vmatpush2.msra.mxu1 %v576_v45  ;;  %685 = vmatpush2.msra.mxu0 %v566_v52  ;;  %v817_v52 = vld [vmem:[#allocation14 + $0x68] sm:$0xff] }
  0xc6   :  { %753 = vmatprep.subr.mxu1 %v573_v47  ;;  %686 = vmatprep.subr.mxu0 %v563_v54  ;;  %v815_v54 = vld [vmem:[#allocation14 + $0x58] sm:$0xff] }
  0xc7   :  { %754 = vmatpush2.msra.mxu1 %v572_v49  ;;  %687 = vmatpush2.msra.mxu0 %v562_v56  ;;  %v1262_v49 = vmov 0.0   ;;  %v813_v56 = vld [vmem:[#allocation14 + $0x48] sm:$0xff] }
  0xc8   :  { %755 = vmatprep.subr.mxu1 %v569_v51  ;;  %688 = vmatprep.subr.mxu0 %v559_v58  ;;  %v818_v51 = vld [vmem:[#allocation14 + $0x70] sm:$0xff]  ;;  %v811_v58 = vld [vmem:[#allocation14 + $0x38] sm:$0xff] }
  0xc9   :  { %756 = vmatpush2.msra.mxu1 %v568_v53  ;;  %689 = vmatpush2.msra.mxu0 %v558_v60  ;;  %v816_v53 = vld [vmem:[#allocation14 + $0x60] sm:$0xff]  ;;  %v809_v60 = vld [vmem:[#allocation14 + $0x28] sm:$0xff] }
  0xca   :  { %757 = vmatprep.subr.mxu1 %v565_v55  ;;  %690 = vmatprep.subr.mxu0 %v555_v62  ;;  %v814_v55 = vld [vmem:[#allocation14 + $0x50] sm:$0xff]  ;;  %v807_v62 = vld [vmem:[#allocation14 + $0x18] sm:$0xff] }
  0xcb   :  { %758 = vmatpush2.msra.mxu1 %v564_v57  ;;  %691 = vmatpush2.msra.mxu0 %v554_v0  ;;  %v812_v57 = vld [vmem:[#allocation14 + $0x40] sm:$0xff]  ;;  %v805_v0 = vld [vmem:[#allocation14 + $0x8] sm:$0xff] }
  0xcc   :  { %759 = vmatprep.subr.mxu1 %v561_v59  ;;  %692 = vmatprep.subr.mxu0 %v551_v2  ;;  %v810_v59 = vld [vmem:[#allocation14 + $0x30] sm:$0xff]  ;;  %v610_v2 = vld [vmem:[%s1466_s7] sm:$0xf]  ;;  %s1264_s7 = smov [#allocation16]  }
  0xcd   :  { %760 = vmatpush2.msra.mxu1 %v560_v61  ;;  %693 = vmatpush2.msra.mxu0 %v550_v4  ;;  %v808_v61 = vld [vmem:[#allocation14 + $0x20] sm:$0xff]  ;;  %v619_v4 = vrot.slane %v610_v2, %v296_v15  ;;  %v627_v14 = vrot.slane %v610_v2, %v304_v23  ;;  %s913_s20 = sshll.u32 %s1264_s7, 4  ;;  %s914_s20 = int_to_ptr.vmem [resolvable:$true] %s913_s20 }
  0xce   :  { %761 = vmatprep.subr.mxu1 %v557_v63  ;;  %694 = vmatprep.subr.mxu0 %v547_v6  ;;  %v806_v63 = vld [vmem:[#allocation14 + $0x10] sm:$0xff]  ;;  %s1180_s23 = scalar_lea.vmem %s914_s20, 256  ;;  %p1185_p3 = scmp.lt.s32.totalorder %s914_s20, %s914_s20 }
  0xcf   :  { %762 = vmatpush2.msra.mxu1 %v556_v1  ;;  %695 = vmatpush2.msra.mxu0 %v546_v8  ;;  %v804_v1 = vld [vmem:[#allocation14] sm:$0xff]  ;;  %p1181_p2 = scmp.ne.s32.totalorder %s914_s20, %s1180_s23  ;;  %p1186_p4 = scmp.lt.s32.totalorder %s1180_s23, %s1180_s23 }
  0xd0   :  { %763 = vmatprep.subr.mxu1 %v553_v3  ;;  %696 = vmatprep.mubr.f32.mxu0 %v479_v9  ;;  %v615_v3 = vrot.slane %v610_v2, %v292_v13  ;;  %v623_v13 = vrot.slane %v610_v2, %v300_v26 }
  0xd1   :  { %764 = vmatpush2.msra.mxu1 %v552_v5  ;;  %767 = vmatprep.mubr.f32.mxu1 %v479_v9  ;;  %p1187_p5 = por %p1186_p4, %p1185_p3 }
  0xd2   :  { %765 = vmatprep.subr.mxu1 %v549_v7  ;;  %986 = vmatprep.subr.mxu0 %v1262_v49 }
  0xd3   :  { %766 = vmatpush2.msra.mxu1 %v548_v10  ;;  %p1188_p6 = pnand %p1187_p5, %p1181_p2 }
 0x150   :  { %v376_v18 = vpop.f32.mrf.mxu0 }
 0x151   :  { %v377_v19 = vadd.f32 %v376_v18, %v293_v16 }
 0x152   :  { %v378_v20 = vpop.f32.mrf.mxu0 }
 0x153   :  { %v962_v21 = vmul.f32 -1.442695, %v377_v19  ;;  %v379_v22 = vadd.f32 %v378_v20, %v297_v17  ;;  %v447_v25 = vpop.f32.mrf.mxu1 }
 0x154   :  { %v448_v31 = vadd.f32 %v447_v25, %v301_v29 }
 0x155   :  { %1036 = vpow2.f32 %v962_v21  ;;  %v963_v24 = vmul.f32 -1.442695, %v379_v22  ;;  %v449_v28 = vpop.f32.mrf.mxu1 }
 0x156   :  { %v450_v30 = vadd.f32 %v449_v28, %v305_v27  ;;  %v481_v27 = vld [vmem:[#allocation9 + $0x8] sm:$0xff] }
 0x157   :  { %1038 = vpow2.f32 %v963_v24 }
 0x158   :  { %v964_v32 = vmul.f32 -1.442695, %v450_v30  ;;  %1040 = vtanh.f32 %v448_v31 }
 0x15a   :  { %1042 = vpow2.f32 %v964_v32 }
 0x162   :  { %v1037_v33 = vpop.eup %1036 }
 0x163   :  { %v455_v34 = vadd.f32 1.0, %v1037_v33 }
 0x164   :  { %v1039_v35 = vpop.eup %1038 }
 0x165   :  { %1044 = vrcp.f32 %v455_v34  ;;  %v461_v36 = vadd.f32 1.0, %v1039_v35  ;;  %v1041_v37 = vpop.eup %1040 }
 0x167   :  { %1046 = vrcp.f32 %v461_v36  ;;  %v1043_v38 = vpop.eup %1042 }
 0x168   :  { %v468_v42 = vadd.f32 1.0, %v1043_v38 }
 0x16a   :  { %1048 = vrcp.f32 %v468_v42 }
 0x172   :  { %v1045_v39 = vpop.eup %1044 }
 0x173   :  { %v472_v44 = vmul.f32 %v1045_v39, %v1041_v37 }
 0x174   :  { %v1047_v41 = vpop.eup %1046 }
 0x175   :  { %v471_v43 = vmul.f32 %v1047_v41, %v159_v40 }
 0x177   :  { %v473_v45 = vadd.f32 %v472_v44, %v471_v43  ;;  %v1049_v46 = vpop.eup %1048 }
 0x179   :  { %1050 = vtanh.f32 %v473_v45  ;;  %477 = vst [vmem:[#allocation18] sm:$0xff] %v473_v45 }
 0x186   :  { %v1051_v47 = vpop.eup %1050 }
 0x187   :  { %v475_v48 = vmul.f32 %v1051_v47, %v1049_v46 }
 0x189   :  { %697 = vmatmul.mubr.f32.vlgmr.msra.gmra.mxu0 %v475_v48  ;;  %476 = vst [vmem:[#allocation16] sm:$0xff] %v475_v48  ;;  %768 = vmatmul.mubr.f32.vlgmr.msra.gmra.mxu1 %v475_v48 }
 0x18a   :  { %987 = vmatpush3.msra.mxu0 %v819_v50  ;;  %1018 = vmatprep.mubr.msk.f32.mxu0 %vm1263_vm0, %v1262_v49 }
 0x18b   :  { %988 = vmatprep.subr.mxu0 %v1262_v49 }
 0x18c   :  { %989 = vmatpush3.msra.mxu0 %v818_v51 }
 0x18d   :  { %990 = vmatprep.subr.mxu0 %v1262_v49 }
 0x18e   :  { %991 = vmatpush3.msra.mxu0 %v817_v52 }
 0x18f   :  { %992 = vmatprep.subr.mxu0 %v1262_v49 }
 0x190   :  { %993 = vmatpush3.msra.mxu0 %v816_v53 }
 0x191   :  { %994 = vmatprep.subr.mxu0 %v1262_v49 }
 0x192   :  { %995 = vmatpush3.msra.mxu0 %v815_v54 }
 0x193   :  { %996 = vmatprep.subr.mxu0 %v1262_v49 }
 0x194   :  { %997 = vmatpush3.msra.mxu0 %v814_v55 }
 0x195   :  { %998 = vmatprep.subr.mxu0 %v1262_v49 }
 0x196   :  { %999 = vmatpush3.msra.mxu0 %v813_v56 }
 0x197   :  { %1000 = vmatprep.subr.mxu0 %v1262_v49 }
 0x198   :  { %1001 = vmatpush3.msra.mxu0 %v812_v57 }
 0x199   :  { %1002 = vmatprep.subr.mxu0 %v1262_v49 }
 0x19a   :  { %1003 = vmatpush3.msra.mxu0 %v811_v58 }
 0x19b   :  { %1004 = vmatprep.subr.mxu0 %v1262_v49 }
 0x19c   :  { %1005 = vmatpush3.msra.mxu0 %v810_v59 }
 0x19d   :  { %1006 = vmatprep.subr.mxu0 %v1262_v49 }
 0x19e   :  { %1007 = vmatpush3.msra.mxu0 %v809_v60 }
 0x19f   :  { %1008 = vmatprep.subr.mxu0 %v1262_v49 }
 0x1a0   :  { %1009 = vmatpush3.msra.mxu0 %v808_v61 }
 0x1a1   :  { %1010 = vmatprep.subr.mxu0 %v1262_v49 }
 0x1a2   :  { %1011 = vmatpush3.msra.mxu0 %v807_v62 }
 0x1a3   :  { %1012 = vmatprep.subr.mxu0 %v1262_v49 }
 0x1a4   :  { %1013 = vmatpush3.msra.mxu0 %v806_v63 }
 0x1a5   :  { %1014 = vmatprep.subr.mxu0 %v1262_v49 }
 0x1a6   :  { %1015 = vmatpush3.msra.mxu0 %v805_v0 }
 0x1a7   :  { %1016 = vmatprep.subr.mxu0 %v1262_v49 }
 0x1a8   :  { %1017 = vmatpush3.msra.mxu0 %v804_v1 }
 0x249   :  { %v698_v5 = vpop.f32.mrf.mxu0  ;;  %v769_v10 = vpop.f32.mrf.mxu1 }
 0x24a   :  { %v699_v6 = vadd.f32 %v698_v5, %v615_v3  ;;  %v770_v15 = vadd.f32 %v769_v10, %v623_v13 }
 0x24b   :  { %v700_v7 = vpop.f32.mrf.mxu0  ;;  %v771_v16 = vpop.f32.mrf.mxu1 }
 0x24c   :  { %v965_v8 = vmul.f32 -1.442695, %v699_v6  ;;  %v701_v9 = vadd.f32 %v700_v7, %v619_v4  ;;  %v772_v17 = vadd.f32 %v771_v16, %v627_v14 }
 0x24e   :  { %1052 = vpow2.f32 %v965_v8  ;;  %v966_v11 = vmul.f32 -1.442695, %v701_v9  ;;  %v967_v18 = vmul.f32 -1.442695, %v772_v17 }
 0x250   :  { %1054 = vpow2.f32 %v966_v11 }
 0x251   :  { %1056 = vpow2.f32 %v967_v18 }
 0x25b   :  { %v1053_v19 = vpop.eup %1052 }
 0x25c   :  { %v777_v20 = vadd.f32 1.0, %v1053_v19 }
 0x25d   :  { %v1055_v21 = vpop.eup %1054 }
 0x25e   :  { %1058 = vrcp.f32 %v777_v20  ;;  %v783_v22 = vadd.f32 1.0, %v1055_v21  ;;  %v1057_v24 = vpop.eup %1056 }
 0x25f   :  { %1060 = vtanh.f32 %v770_v15  ;;  %v790_v29 = vadd.f32 1.0, %v1057_v24 }
 0x260   :  { %1062 = vrcp.f32 %v783_v22 }
 0x261   :  { %1064 = vrcp.f32 %v790_v29 }
 0x26b   :  { %v1059_v25 = vpop.eup %1058 }
 0x26c   :  { %v1061_v28 = vpop.eup %1060 }
 0x26d   :  { %v1063_v23 = vpop.eup %1062  ;;  %v794_v30 = vmul.f32 %v1061_v28, %v1059_v25 }
 0x26e   :  { %v793_v31 = vmul.f32 %v1063_v23, %v481_v27  ;;  %v1065_v26 = vpop.eup %1064 }
 0x270   :  { %v795_v12 = vadd.f32 %v794_v30, %v793_v31 }
 0x272   :  { %801 = vst [vmem:[#allocation18 + $0x8] sm:$0xff] %v795_v12  ;;  %1066 = vtanh.f32 %v795_v12 }
 0x27f   :  { %v1067_v32 = vpop.eup %1066 }
 0x280   :  { %v797_v33 = vmul.f32 %v1067_v32, %v1065_v26 }
 0x282   :  { %1019 = vmatmul.mubr.f32.vlgmr.msra.gmra.mxu0 %v797_v33  ;;  %799 = vst [vmem:[#allocation16 + $0x8] sm:$0xff] %v797_v33 }
 0x283   :  { %1191 = shalt.err (!%p1188_p6)
}
 0x284   :  { %919 = dma.vmem_to_hbm [thread:$0]  %s914_s20, 256, %s1470_s11, [#allocation17], %s1253_s24, %s1253_s24, %s1254_s25  }
 0x285   :  { %s1265_s30 = smov [#allocation18]  }
 0x286   :  { %s925_s13 = sshll.u32 %s1265_s30, 4  ;;  %s926_s13 = int_to_ptr.vmem [resolvable:$true] %s925_s13 }
 0x287   :  { %s1200_s14 = scalar_lea.vmem %s926_s13, 256  ;;  %p1205_p8 = scmp.lt.s32.totalorder %s926_s13, %s926_s13 }
 0x288   :  { %p1201_p7 = scmp.ne.s32.totalorder %s926_s13, %s1200_s14  ;;  %p1206_p9 = scmp.lt.s32.totalorder %s1200_s14, %s1200_s14 }
 0x28a   :  { %p1207_p10 = por %p1206_p9, %p1205_p8 }
 0x28c   :  { %p1208_p11 = pnand %p1207_p10, %p1201_p7 }
 0x28e   :  { %1211 = shalt.err (!%p1208_p11)
}
 0x28f   :  { %931 = dma.vmem_to_hbm [thread:$0]  %s926_s13, 256, %s1471_s12, [#allocation17], %s1253_s24, %s1253_s24, %s1254_s25  }
 0x290   :  { %v968_v34 = vld [vmem:[%s1468_s9] ss:$0 sm:$0xff]  ;;  %s1266_s11 = smov [#allocation15]  }
 0x291   :  { %s904_s8 = sshll.u32 %s1266_s11, 4  ;;  %s905_s8 = int_to_ptr.vmem [resolvable:$true] %s904_s8 }
 0x292   :  { %s1220_s16 = scalar_lea.vmem %s905_s8, 128  ;;  %p1225_p13 = scmp.lt.s32.totalorder %s905_s8, %s905_s8 }
 0x293   :  { %p1221_p12 = scmp.ne.s32.totalorder %s905_s8, %s1220_s16  ;;  %p1226_p0 = scmp.lt.s32.totalorder %s1220_s16, %s1220_s16 }
 0x295   :  { %p1227_p1 = por %p1226_p0, %p1225_p13 }
 0x297   :  { %p1228_p2 = pnand %p1227_p1, %p1221_p12 }
 0x342   :  { %v893_v35 = vpop.f32.mrf.mxu0 }
 0x343   :  { %v894_v36 = vadd.f32 %v968_v34, %v893_v35 }
 0x344   :  { %v1020_v37 = vpop.f32.mrf.mxu0 }
 0x345   :  { %897 = vst [vmem:[#allocation15] sm:$0xff] %v894_v36 }
 0x346   :  { %1231 = shalt.err (!%p1228_p2)
}
 0x347   :  { %907 = dma.vmem_to_hbm [thread:$0]  %s905_s8, 128, %s1469_s10, [#allocation6]  }
 0x348   :  { %1248 = dma.done.wait [#allocation6], 128  }
 0x349   :  { %1249 = vsyncadd [#allocation6], 4294967168 }
 0x34a   :  { %1250 = dma.done.wait [#allocation17], 512  }
 0x34b   :  { %1251 = vsyncadd [#allocation17], 4294966784 }
 0x34c   :  { %941 = vsyncpa [#allocation5], 1 }
 0x34d   :  { %942 = vsyncpa [#allocation10], 1 }
 0x34e   :  { %943 = vsyncpa [#allocation13], 1 }
 0x34f   :  { %944 = vsyncpa [#allocation6], 1 }
 0x350   :  { %945 = vsyncpa [#allocation17], 1 }
 0x351   :  { %946 = vsyncpa [#allocation7], 1 }

</bundles_post_ra>
